<compile_context>
chip_gen: v7x
topology: tpu7x:2x2x1
jax: 0.10.0
libtpu: 0.0.40
codegen_flags: <defaults>
</compile_context>

<pallas_src>
import functools

import jax
import jax.numpy as jnp
import numpy as np
from jax.experimental import pallas as pl
from jax.experimental.pallas import tpu as pltpu


def mrconv2d_kernel(xf_ref, xt_ref, e_ref, w_ref, b_ref, o_ref, *, kc, center_is_self):
    x = xf_ref[0]                          # (C, Np)  all source nodes, nodes on lanes
    x_t = xt_ref[0]                        # (C, TN)  this output-node tile
    Np = x.shape[1]
    TN = x_t.shape[1]

    ej = e_ref[0, 0]                       # (KP, TN) neighbor ids
    ei = None if center_is_self else e_ref[1, 0]   # (KP, TN) center ids (general path only)
    KP = ej.shape[0]

    # Sublane-index iota shared by every one-hot build (hoisted: JAX won't CSE it).
    row = jax.lax.broadcasted_iota(jnp.int32, (Np, TN), 0)

    rel = None
    for c0 in range(0, KP, kc):            # static, unrolled chunk loop over neighbors
        pieces = []
        for q in range(kc):
            s = (row == ej[c0 + q:c0 + q + 1, :]).astype(x.dtype)            # S_j   (Np, TN)
            if not center_is_self:
                s = s - (row == ei[c0 + q:c0 + q + 1, :]).astype(x.dtype)    # S_j - S_i
            pieces.append(s)
        slab = pieces[0] if kc == 1 else jnp.concatenate(pieces, axis=1)     # (Np, kc*TN)
        # One streamed MXU call for the whole chunk instead of kc tiny matmuls.
        res = jnp.dot(x, slab, preferred_element_type=jnp.float32)           # (C, kc*TN)
        for q in range(kc):                # lane-aligned static slices (vreg selection)
            d = res[:, q * TN:(q + 1) * TN]
            rel = d if rel is None else jnp.maximum(rel, d)

    if center_is_self:
        # x_i is k-invariant and equal to the node itself: rel = max_k(x_j) - x
        rel = rel - x_t.astype(jnp.float32)

    # Fused densified grouped-1x1 conv + bias + ReLU:  (Cout, 2C) @ (2C, TN)
    xin = jnp.concatenate([x_t.astype(jnp.float32), rel], axis=0)            # (2C, TN)
    out = jnp.dot(w_ref[...], xin, preferred_element_type=jnp.float32) + b_ref[...]
    o_ref[0] = jnp.maximum(out, 0.0).astype(o_ref.dtype)


def mrconv2d_pallas(x, edge_index, W, bias, groups=4, tn=128, kc=2, center_is_self=None):
    """x: (B, C, N, 1) f32, edge_index: (2, B, N, K) int, W: (Cout, 2C//groups, 1, 1), bias: (Cout,)."""
    B, C, N, _ = x.shape
    K = edge_index.shape[-1]
    Cout = W.shape[0]

    # ---- fast-path detection: real ViG edge_index has edge_index[1][b,n,k] == n ----
    if center_is_self is None:
        try:
            ci = np.asarray(edge_index[1])
            center_is_self = bool((ci == np.arange(N)[None, :, None]).all())
        except Exception:                  # traced / non-concrete inputs -> general path
            center_is_self = False

    # ---- pad node axis to a lane-dense multiple of tn (>=128) and K to a multiple of kc ----
    tn = max(128, tn)
    Np = ((N + tn - 1) // tn) * tn
    kc = max(1, min(kc, K))
    KP = ((K + kc - 1) // kc) * kc

    xs = x[..., 0]                                               # (B, C, N)
    if Np != N:
        xs = jnp.pad(xs, ((0, 0), (0, 0), (0, Np - N)))
    e = edge_index.astype(jnp.int32)
    if KP != K:                                                  # repeat last neighbor: max-invariant
        e = jnp.concatenate([e, jnp.repeat(e[..., -1:], KP - K, axis=-1)], axis=-1)
    if Np != N:                                                  # pad nodes gather node 0; outputs dropped
        e = jnp.pad(e, ((0, 0), (0, 0), (0, Np - N), (0, 0)))
    e_kn = jnp.transpose(e, (0, 1, 3, 2))                        # (2, B, KP, Np): nodes on lanes

    # ---- densify grouped 1x1 conv, split interleaved channels, fuse into one weight ----
    W2 = W[..., 0, 0]                                            # (Cout, 2C//groups)
    Gin, Gout = 2 * C // groups, Cout // groups
    Wfull = jnp.zeros((Cout, 2 * C), W.dtype)                    # block-diagonal dense equivalent
    for g in range(groups):
        Wfull = Wfull.at[g * Gout:(g + 1) * Gout, g * Gin:(g + 1) * Gin].set(
            W2[g * Gout:(g + 1) * Gout])
    # interleaved channel 2c -> x_c (even cols), 2c+1 -> rel_c (odd cols); fuse [Wx | Wrel]
    Wcat = jnp.concatenate([Wfull[:, 0::2], Wfull[:, 1::2]], axis=1)   # (Cout, 2C)
    b2 = bias.reshape(Cout, 1)

    T = Np // tn
    kernel = functools.partial(mrconv2d_kernel, kc=kc, center_is_self=center_is_self)
    out = pl.pallas_call(
        kernel,
        out_shape=jax.ShapeDtypeStruct((B, Cout, Np), x.dtype),
        grid_spec=pltpu.PrefetchScalarGridSpec(
            num_scalar_prefetch=0,
            grid=(B, T),
            in_specs=[
                pl.BlockSpec((1, C, Np), lambda b, t: (b, 0, 0)),      # x, all source nodes
                pl.BlockSpec((1, C, tn), lambda b, t: (b, 0, t)),      # x, this output-node tile
                pl.BlockSpec((2, 1, KP, tn), lambda b, t: (0, b, 0, t)),
                pl.BlockSpec((Cout, 2 * C), lambda b, t: (0, 0)),
                pl.BlockSpec((Cout, 1), lambda b, t: (0, 0)),
            ],
            out_specs=pl.BlockSpec((1, Cout, tn), lambda b, t: (b, 0, t)),
        ),
        compiler_params=pltpu.CompilerParams(
            dimension_semantics=("parallel", "parallel")),
    )(xs, xs, e_kn, Wcat, b2)
    return out[:, :, :N, None]                                   # (B, Cout, N, 1)


def mrconv2d_ref(x, edge_index, W, bias, groups=4):
    """Pure-JAX reference reproducing the PyTorch forward literally."""
    B, C, N, _ = x.shape
    Cout = W.shape[0]
    xs = x[..., 0]                                               # (B, C, N)

    def gather(xb, idxb):                                        # xb (C,N), idxb (N,K)
        return xb[:, idxb]                                       # (C, N, K)

    x_j = jax.vmap(gather)(xs, edge_index[0])
    x_i = jax.vmap(gather)(xs, edge_index[1])
    rel = jnp.max(x_j - x_i, axis=-1)                            # (B, C, N)
    xin = jnp.stack([xs, rel], axis=2).reshape(B, 2 * C, N)      # interleaved channels

    W2 = W[..., 0, 0]
    Gin, Gout = 2 * C // groups, Cout // groups
    outs = []
    for g in range(groups):
        xg = xin[:, g * Gin:(g + 1) * Gin, :]
        wg = W2[g * Gout:(g + 1) * Gout, :]
        outs.append(jnp.einsum('oi,bin->bon', wg, xg))
    out = jnp.concatenate(outs, axis=1) + bias[None, :, None]
    return jnp.maximum(out, 0.0)[..., None]


if __name__ == "__main__":
    B, C, N, K, Cout, groups = 2, 8, 196, 9, 16, 4   # ViG-like toy sizes; BasicConv uses groups=4

    key = jax.random.PRNGKey(0)
    k1, k2, k3, k4, k5 = jax.random.split(key, 5)
    x = jax.random.normal(k1, (B, C, N, 1), jnp.float32)
    W = 0.1 * jax.random.normal(k3, (Cout, 2 * C // groups, 1, 1), jnp.float32)
    bias = 0.1 * jax.random.normal(k4, (Cout,), jnp.float32)

    # (1) realistic ViG edge_index: centers are the nodes themselves -> gated fast path
    nbr = jax.random.randint(k2, (B, N, K), 0, N, jnp.int32)
    ctr = jnp.broadcast_to(jnp.arange(N, dtype=jnp.int32)[None, :, None], (B, N, K))
    e_vig = jnp.stack([nbr, ctr], axis=0)
    out1 = jax.block_until_ready(mrconv2d_pallas(x, e_vig, W, bias, groups))
    ref1 = mrconv2d_ref(x, e_vig, W, bias, groups)
    assert out1.shape == (B, Cout, N, 1)
    np.testing.assert_allclose(np.asarray(out1), np.asarray(ref1), rtol=1e-4, atol=1e-4)

    # (2) arbitrary centers -> general (S_j - S_i) path
    e_rand = jax.random.randint(k5, (2, B, N, K), 0, N, jnp.int32)
    out2 = jax.block_until_ready(mrconv2d_pallas(x, e_rand, W, bias, groups))
    ref2 = mrconv2d_ref(x, e_rand, W, bias, groups)
    np.testing.assert_allclose(np.asarray(out2), np.asarray(ref2), rtol=1e-4, atol=1e-4)

    print("KERNEL_OK")
</pallas_src>

<mosaic_0001>
module attributes {stable_mosaic.version = 11 : i64} {
  func.func @mrconv2d_kernel(%arg0: i32, %arg1: i32, %arg2: memref<1x8x256xf32, #tpu.memory_space<vmem>>, %arg3: memref<1x8x128xf32, #tpu.memory_space<vmem>>, %arg4: memref<2x1x10x128xi32, #tpu.memory_space<vmem>>, %arg5: memref<16x16xf32, #tpu.memory_space<vmem>>, %arg6: memref<16x1xf32, #tpu.memory_space<vmem>>, %arg7: memref<1x16x128xf32, #tpu.memory_space<vmem>>) attributes {dimension_semantics = [#tpu.dimension_semantics<parallel>, #tpu.dimension_semantics<parallel>], iteration_bounds = array<i64: 2, 2>, scalar_prefetch = 0 : i64, scratch_operands = 0 : i64, tpu.core_type = #tpu.core_type<tc>, window_params = [{transform_indices = @transform_0, window_bounds = array<i64: 1, 8, 256>}, {transform_indices = @transform_1, window_bounds = array<i64: 1, 8, 128>}, {transform_indices = @transform_2, window_bounds = array<i64: 2, 1, 10, 128>}, {pipeline_mode = #tpu.pipeline_mode<synchronous>, transform_indices = @transform_3, window_bounds = array<i64: 16, 16>}, {pipeline_mode = #tpu.pipeline_mode<synchronous>, transform_indices = @transform_4, window_bounds = array<i64: 16, 1>}, {transform_indices = @transform_5, window_bounds = array<i64: 1, 16, 128>}]} {
    %c0 = arith.constant 0 : index
    %c0_0 = arith.constant 0 : index
    %c0_1 = arith.constant 0 : index
    %0 = vector.load %arg2[%c0, %c0_0, %c0_1] : memref<1x8x256xf32, #tpu.memory_space<vmem>>, vector<1x8x256xf32>
    %1 = vector.shape_cast %0 : vector<1x8x256xf32> to vector<8x256xf32>
    %c0_2 = arith.constant 0 : index
    %c0_3 = arith.constant 0 : index
    %c0_4 = arith.constant 0 : index
    %2 = vector.load %arg3[%c0_2, %c0_3, %c0_4] : memref<1x8x128xf32, #tpu.memory_space<vmem>>, vector<1x8x128xf32>
    %3 = vector.shape_cast %2 : vector<1x8x128xf32> to vector<8x128xf32>
    %c0_5 = arith.constant 0 : index
    %c0_6 = arith.constant 0 : index
    %c0_7 = arith.constant 0 : index
    %c0_8 = arith.constant 0 : index
    %4 = vector.load %arg4[%c0_5, %c0_6, %c0_7, %c0_8] : memref<2x1x10x128xi32, #tpu.memory_space<vmem>>, vector<1x1x10x128xi32>
    %5 = vector.shape_cast %4 : vector<1x1x10x128xi32> to vector<10x128xi32>
    %6 = tpu.iota {dimensions = array<i32: 0>} : vector<256x128xi32>
    %7 = vector.extract_strided_slice %5 {offsets = [0, 0], sizes = [1, 128], strides = [1, 1]} : vector<10x128xi32> to vector<1x128xi32>
    %8 = vector.broadcast %7 : vector<1x128xi32> to vector<256x128xi32>
    %9 = arith.cmpi eq, %6, %8 : vector<256x128xi32>
    %10 = arith.extui %9 : vector<256x128xi1> to vector<256x128xi32>
    %11 = arith.sitofp %10 : vector<256x128xi32> to vector<256x128xf32>
    %12 = vector.extract_strided_slice %5 {offsets = [1, 0], sizes = [1, 128], strides = [1, 1]} : vector<10x128xi32> to vector<1x128xi32>
    %13 = vector.broadcast %12 : vector<1x128xi32> to vector<256x128xi32>
    %14 = arith.cmpi eq, %6, %13 : vector<256x128xi32>
    %15 = arith.extui %14 : vector<256x128xi1> to vector<256x128xi32>
    %16 = arith.sitofp %15 : vector<256x128xi32> to vector<256x128xf32>
    %17 = tpu.concatenate %11, %16 in 1 : vector<256x128xf32>, vector<256x128xf32> -> vector<256x256xf32>
    %cst = arith.constant dense<0.000000e+00> : vector<8x256xf32>
    %18 = tpu.matmul %1, %17, %cst {dimension_numbers = #tpu.dot_dimension_numbers<[1], [0], [0], [1], [0, 0, 1, 1], [], []>} : vector<8x256xf32>, vector<256x256xf32>, vector<8x256xf32> -> vector<8x256xf32>
    %19 = vector.extract_strided_slice %18 {offsets = [0, 0], sizes = [8, 128], strides = [1, 1]} : vector<8x256xf32> to vector<8x128xf32>
    %20 = vector.extract_strided_slice %18 {offsets = [0, 128], sizes = [8, 128], strides = [1, 1]} : vector<8x256xf32> to vector<8x128xf32>
    %21 = arith.maximumf %19, %20 : vector<8x128xf32>
    %22 = vector.extract_strided_slice %5 {offsets = [2, 0], sizes = [1, 128], strides = [1, 1]} : vector<10x128xi32> to vector<1x128xi32>
    %23 = vector.broadcast %22 : vector<1x128xi32> to vector<256x128xi32>
    %24 = arith.cmpi eq, %6, %23 : vector<256x128xi32>
    %25 = arith.extui %24 : vector<256x128xi1> to vector<256x128xi32>
    %26 = arith.sitofp %25 : vector<256x128xi32> to vector<256x128xf32>
    %27 = vector.extract_strided_slice %5 {offsets = [3, 0], sizes = [1, 128], strides = [1, 1]} : vector<10x128xi32> to vector<1x128xi32>
    %28 = vector.broadcast %27 : vector<1x128xi32> to vector<256x128xi32>
    %29 = arith.cmpi eq, %6, %28 : vector<256x128xi32>
    %30 = arith.extui %29 : vector<256x128xi1> to vector<256x128xi32>
    %31 = arith.sitofp %30 : vector<256x128xi32> to vector<256x128xf32>
    %32 = tpu.concatenate %26, %31 in 1 : vector<256x128xf32>, vector<256x128xf32> -> vector<256x256xf32>
    %cst_9 = arith.constant dense<0.000000e+00> : vector<8x256xf32>
    %33 = tpu.matmul %1, %32, %cst_9 {dimension_numbers = #tpu.dot_dimension_numbers<[1], [0], [0], [1], [0, 0, 1, 1], [], []>} : vector<8x256xf32>, vector<256x256xf32>, vector<8x256xf32> -> vector<8x256xf32>
    %34 = vector.extract_strided_slice %33 {offsets = [0, 0], sizes = [8, 128], strides = [1, 1]} : vector<8x256xf32> to vector<8x128xf32>
    %35 = arith.maximumf %21, %34 : vector<8x128xf32>
    %36 = vector.extract_strided_slice %33 {offsets = [0, 128], sizes = [8, 128], strides = [1, 1]} : vector<8x256xf32> to vector<8x128xf32>
    %37 = arith.maximumf %35, %36 : vector<8x128xf32>
    %38 = vector.extract_strided_slice %5 {offsets = [4, 0], sizes = [1, 128], strides = [1, 1]} : vector<10x128xi32> to vector<1x128xi32>
    %39 = vector.broadcast %38 : vector<1x128xi32> to vector<256x128xi32>
    %40 = arith.cmpi eq, %6, %39 : vector<256x128xi32>
    %41 = arith.extui %40 : vector<256x128xi1> to vector<256x128xi32>
    %42 = arith.sitofp %41 : vector<256x128xi32> to vector<256x128xf32>
    %43 = vector.extract_strided_slice %5 {offsets = [5, 0], sizes = [1, 128], strides = [1, 1]} : vector<10x128xi32> to vector<1x128xi32>
    %44 = vector.broadcast %43 : vector<1x128xi32> to vector<256x128xi32>
    %45 = arith.cmpi eq, %6, %44 : vector<256x128xi32>
    %46 = arith.extui %45 : vector<256x128xi1> to vector<256x128xi32>
    %47 = arith.sitofp %46 : vector<256x128xi32> to vector<256x128xf32>
    %48 = tpu.concatenate %42, %47 in 1 : vector<256x128xf32>, vector<256x128xf32> -> vector<256x256xf32>
    %cst_10 = arith.constant dense<0.000000e+00> : vector<8x256xf32>
    %49 = tpu.matmul %1, %48, %cst_10 {dimension_numbers = #tpu.dot_dimension_numbers<[1], [0], [0], [1], [0, 0, 1, 1], [], []>} : vector<8x256xf32>, vector<256x256xf32>, vector<8x256xf32> -> vector<8x256xf32>
    %50 = vector.extract_strided_slice %49 {offsets = [0, 0], sizes = [8, 128], strides = [1, 1]} : vector<8x256xf32> to vector<8x128xf32>
    %51 = arith.maximumf %37, %50 : vector<8x128xf32>
    %52 = vector.extract_strided_slice %49 {offsets = [0, 128], sizes = [8, 128], strides = [1, 1]} : vector<8x256xf32> to vector<8x128xf32>
    %53 = arith.maximumf %51, %52 : vector<8x128xf32>
    %54 = vector.extract_strided_slice %5 {offsets = [6, 0], sizes = [1, 128], strides = [1, 1]} : vector<10x128xi32> to vector<1x128xi32>
    %55 = vector.broadcast %54 : vector<1x128xi32> to vector<256x128xi32>
    %56 = arith.cmpi eq, %6, %55 : vector<256x128xi32>
    %57 = arith.extui %56 : vector<256x128xi1> to vector<256x128xi32>
    %58 = arith.sitofp %57 : vector<256x128xi32> to vector<256x128xf32>
    %59 = vector.extract_strided_slice %5 {offsets = [7, 0], sizes = [1, 128], strides = [1, 1]} : vector<10x128xi32> to vector<1x128xi32>
    %60 = vector.broadcast %59 : vector<1x128xi32> to vector<256x128xi32>
    %61 = arith.cmpi eq, %6, %60 : vector<256x128xi32>
    %62 = arith.extui %61 : vector<256x128xi1> to vector<256x128xi32>
    %63 = arith.sitofp %62 : vector<256x128xi32> to vector<256x128xf32>
    %64 = tpu.concatenate %58, %63 in 1 : vector<256x128xf32>, vector<256x128xf32> -> vector<256x256xf32>
    %cst_11 = arith.constant dense<0.000000e+00> : vector<8x256xf32>
    %65 = tpu.matmul %1, %64, %cst_11 {dimension_numbers = #tpu.dot_dimension_numbers<[1], [0], [0], [1], [0, 0, 1, 1], [], []>} : vector<8x256xf32>, vector<256x256xf32>, vector<8x256xf32> -> vector<8x256xf32>
    %66 = vector.extract_strided_slice %65 {offsets = [0, 0], sizes = [8, 128], strides = [1, 1]} : vector<8x256xf32> to vector<8x128xf32>
    %67 = arith.maximumf %53, %66 : vector<8x128xf32>
    %68 = vector.extract_strided_slice %65 {offsets = [0, 128], sizes = [8, 128], strides = [1, 1]} : vector<8x256xf32> to vector<8x128xf32>
    %69 = arith.maximumf %67, %68 : vector<8x128xf32>
    %70 = vector.extract_strided_slice %5 {offsets = [8, 0], sizes = [1, 128], strides = [1, 1]} : vector<10x128xi32> to vector<1x128xi32>
    %71 = vector.broadcast %70 : vector<1x128xi32> to vector<256x128xi32>
    %72 = arith.cmpi eq, %6, %71 : vector<256x128xi32>
    %73 = arith.extui %72 : vector<256x128xi1> to vector<256x128xi32>
    %74 = arith.sitofp %73 : vector<256x128xi32> to vector<256x128xf32>
    %75 = vector.extract_strided_slice %5 {offsets = [9, 0], sizes = [1, 128], strides = [1, 1]} : vector<10x128xi32> to vector<1x128xi32>
    %76 = vector.broadcast %75 : vector<1x128xi32> to vector<256x128xi32>
    %77 = arith.cmpi eq, %6, %76 : vector<256x128xi32>
    %78 = arith.extui %77 : vector<256x128xi1> to vector<256x128xi32>
    %79 = arith.sitofp %78 : vector<256x128xi32> to vector<256x128xf32>
    %80 = tpu.concatenate %74, %79 in 1 : vector<256x128xf32>, vector<256x128xf32> -> vector<256x256xf32>
    %cst_12 = arith.constant dense<0.000000e+00> : vector<8x256xf32>
    %81 = tpu.matmul %1, %80, %cst_12 {dimension_numbers = #tpu.dot_dimension_numbers<[1], [0], [0], [1], [0, 0, 1, 1], [], []>} : vector<8x256xf32>, vector<256x256xf32>, vector<8x256xf32> -> vector<8x256xf32>
    %82 = vector.extract_strided_slice %81 {offsets = [0, 0], sizes = [8, 128], strides = [1, 1]} : vector<8x256xf32> to vector<8x128xf32>
    %83 = arith.maximumf %69, %82 : vector<8x128xf32>
    %84 = vector.extract_strided_slice %81 {offsets = [0, 128], sizes = [8, 128], strides = [1, 1]} : vector<8x256xf32> to vector<8x128xf32>
    %85 = arith.maximumf %83, %84 : vector<8x128xf32>
    %86 = arith.subf %85, %3 : vector<8x128xf32>
    %87 = tpu.concatenate %3, %86 in 0 : vector<8x128xf32>, vector<8x128xf32> -> vector<16x128xf32>
    %c0_13 = arith.constant 0 : index
    %c0_14 = arith.constant 0 : index
    %88 = vector.load %arg5[%c0_13, %c0_14] : memref<16x16xf32, #tpu.memory_space<vmem>>, vector<16x16xf32>
    %cst_15 = arith.constant dense<0.000000e+00> : vector<16x128xf32>
    %89 = tpu.matmul %88, %87, %cst_15 {dimension_numbers = #tpu.dot_dimension_numbers<[1], [0], [0], [1], [0, 0, 1, 1], [], []>} : vector<16x16xf32>, vector<16x128xf32>, vector<16x128xf32> -> vector<16x128xf32>
    %c0_16 = arith.constant 0 : index
    %c0_17 = arith.constant 0 : index
    %90 = vector.load %arg6[%c0_16, %c0_17] : memref<16x1xf32, #tpu.memory_space<vmem>>, vector<16x1xf32>
    %91 = vector.broadcast %90 : vector<16x1xf32> to vector<16x128xf32>
    %92 = arith.addf %89, %91 : vector<16x128xf32>
    %cst_18 = arith.constant 0.000000e+00 : f32
    %93 = vector.broadcast %cst_18 : f32 to vector<16x128xf32>
    %94 = arith.maximumf %92, %93 : vector<16x128xf32>
    %c0_19 = arith.constant 0 : index
    %c0_20 = arith.constant 0 : index
    %c0_21 = arith.constant 0 : index
    %95 = vector.load %arg7[%c0_19, %c0_20, %c0_21] : memref<1x16x128xf32, #tpu.memory_space<vmem>>, vector<1x16x128xf32>
    %96 = vector.shape_cast %95 : vector<1x16x128xf32> to vector<16x128xf32>
    %97 = vector.shape_cast %94 : vector<16x128xf32> to vector<1x16x128xf32>
    tpu.vector_store %arg7[%c0_19, %c0_20, %c0_21], %97 {strides = array<i32>} : memref<1x16x128xf32, #tpu.memory_space<vmem>>, vector<1x16x128xf32>,
    return
  }
  func.func @transform_0(%arg0: i32, %arg1: i32) -> (i32, i32, i32) {
    %c0_i32 = arith.constant 0 : i32
    %c0_i32_0 = arith.constant 0 : i32
    %c0_i32_1 = arith.constant 0 : i32
    return %arg0, %c0_i32, %c0_i32_0 : i32, i32, i32
  }
  func.func @transform_1(%arg0: i32, %arg1: i32) -> (i32, i32, i32) {
    %c0_i32 = arith.constant 0 : i32
    %c0_i32_0 = arith.constant 0 : i32
    return %arg0, %c0_i32, %arg1 : i32, i32, i32
  }
  func.func @transform_2(%arg0: i32, %arg1: i32) -> (i32, i32, i32, i32) {
    %c0_i32 = arith.constant 0 : i32
    %c0_i32_0 = arith.constant 0 : i32
    %c0_i32_1 = arith.constant 0 : i32
    return %c0_i32, %arg0, %c0_i32_0, %arg1 : i32, i32, i32, i32
  }
  func.func @transform_3(%arg0: i32, %arg1: i32) -> (i32, i32) {
    %c0_i32 = arith.constant 0 : i32
    %c0_i32_0 = arith.constant 0 : i32
    %c0_i32_1 = arith.constant 0 : i32
    return %c0_i32, %c0_i32_0 : i32, i32
  }
  func.func @transform_4(%arg0: i32, %arg1: i32) -> (i32, i32) {
    %c0_i32 = arith.constant 0 : i32
    %c0_i32_0 = arith.constant 0 : i32
    %c0_i32_1 = arith.constant 0 : i32
    return %c0_i32, %c0_i32_0 : i32, i32
  }
  func.func @transform_5(%arg0: i32, %arg1: i32) -> (i32, i32, i32) {
    %c0_i32 = arith.constant 0 : i32
    %c0_i32_0 = arith.constant 0 : i32
    return %arg0, %c0_i32, %arg1 : i32, i32, i32
  }
}

</mosaic_0001>

<bundles_post_ra>
// kernel: tpu_custom_call.1
= control target key start
LH: loop header
LB: loop body
LE: loop exit
PB: predicated region body
PF: predicated region fallthrough
CT: control target
= control target key end

     0   :  { %10 = vsyncpa [#allocation4], 0  ;;  %s5008_s0 = inlined_call_operand.vmem [shape: f32[2,8,256], index: 0, kind: input, shape index: {}]   ;;  %s5009_s1 = inlined_call_operand.vmem [shape: f32[2,8,256], index: 1, kind: input, shape index: {}]   ;;  %s5010_s2 = inlined_call_operand.vmem [shape: s32[2,2,10,256], index: 2, kind: input, shape index: {}]   ;;  %s5011_s3 = inlined_call_operand.vmem [shape: f32[16,16], index: 3, kind: input, shape index: {}]   ;;  %s5012_s4 = inlined_call_operand.vmem [shape: f32[16,1], index: 4, kind: input, shape index: {}]   ;;  %s5013_s5 = inlined_call_operand.hbm [shape: f32[2,16,256], index: 5, kind: output, shape index: {}]  }
   0x1   :  { %12 = vsyncpa [#allocation4 + $0x1], 0  ;;  %s3176_s18 = smov 0   ;;  %s3178_s19 = smov 0  }
   0x2   :  { %s3180_s20 = smov 0   ;;  %s3182_s21 = smov 0  }
   0x3   :  { %s3184_s22 = smov 0   ;;  %s3186_s23 = smov 0  }
   0x4   :  { %s3188_s24 = smov 0   ;;  %s3190_s25 = smov 0  }
   0x5 LB: > { %s1969_s26 = sadd.s32 4294967295, %s3138_s25   ;;  %s1970_s27 = sadd.s32 4294967294, %s3138_s25   ;;  %s3138_s25 = sphi %s3190_s25, %s18_s25   ;;  %s3134_s24 = sphi %s3188_s24, %s5198_s24   ;;  %s3130_s23 = sphi %s3186_s23, %s5197_s23   ;;  %s3126_s22 = sphi %s3184_s22, %s5196_s22   ;;  %s3122_s21 = sphi %s3182_s21, %s5195_s21   ;;  %s3118_s20 = sphi %s3180_s20, %s5194_s20   ;;  %s3114_s19 = sphi %s3178_s19, %s5193_s19   ;;  %s3110_s18 = sphi %s3176_s18, %s5192_s18  }
   0x6   : > { %s27_s28 = sadd.s32 1, %s3130_s23  ;;  %s30_s29 = sadd.s32 1, %s3134_s24 }
   0x7   : > { %p28_p0 = scmp.ge.s32.totalorder %s27_s28, 2  ;;  %p100_p1 = scmp.ne.s32.totalorder %s3118_s20, %s3114_s19 }
   0x8   : > { %p101_p2 = scmp.eq.s32.totalorder %s3138_s25, 0  ;;  %p174_p5 = scmp.eq.s32.totalorder %s1969_s26, 3 }
   0x9   : > { %s5200_s28 = smov (%p28_p0, %s27_s28), 0  ;;  %s5202_s29 = smov (!%p28_p0, %s30_s29), %s3134_s24 }
   0xa   : > { %s89_s30 = ssub.s32 %s3130_s23, %s5200_s28  ;;  %p3228_p3 = por %p101_p2, %p100_p1 }
   0xb   : > { %p32_p4 = scmp.ge.s32.totalorder %s5202_s29, 2  ;;  %p179_p6 = scmp.ne.s32.totalorder %s3114_s19, %s3110_s18 }
   0xc   : > { %p180_p7 = scmp.eq.s32.totalorder %s1970_s27, 3  ;;  %p3236_p8 = por %p174_p5, %p100_p1 }
   0xd   : > { %s5204_s29 = smov (%p32_p4, %s5202_s29), 0  ;;  %s93_s11 = sadd.s32 1, %s3118_s20 }
   0xe   : > { %p3240_p9 = por %p180_p7, %p179_p6  ;;  %s88_s9 = ssub.s32 %s3134_s24, %s5204_s29 }
   0xf   : > { %s90_s10 = sor.u32 %s89_s30, %s88_s9  ;;  %p1972_p11 = scmp.ge.s32.totalorder %s3138_s25, 4 }
  0x10   : > { %p91_p10 = scmp.eq.s32.totalorder %s90_s10, 0 }
  0x11   : > { %202 = sbr.rel (%p1972_p11) target bundleno = 32 (0x20), region = 24 }
  0x12   : > { %s3248_s12 = scalar_select %p91_p10, %s3118_s20, %s93_s11  }
  0x18   : > { %224 = sbr.rel (!%p3228_p3) target bundleno = 32 (0x20), region = 36  ;;  %s226_s13 = sand.u32 (%p3228_p3), 1, %s3118_s20  }
  0x19   : > { %s1974_s14 = sshll.u32 (%p3228_p3), %s3134_s24, 2  ;;  %s1973_s15 = sshll.u32 (%p3228_p3), %s226_s13, 5 }
  0x1a   : > { %s230_s16 = sadd.s32 (%p3228_p3), %s3130_s23, %s1974_s14  ;;  %s228_s9 = scalar_lea.vmem (%p3228_p3), [#allocation2], %s1973_s15 }
  0x1b   : > { %s1975_s17 = sshll.u32 (%p3228_p3), %s230_s16, 3 }
  0x1c   : > { %s232_s30 = scalar_lea.vmem (%p3228_p3), %s5010_s2, %s1975_s17 }
  0x1d   : > { %v266_v0 = vld [vmem:[%s232_s30] sm:$0xff] (%p3228_p3)  ;;  %v268_v1 = vld [vmem:[%s232_s30 + $0x10] sm:$0xff] (%p3228_p3) }
  0x1e   : > { %v270_v2 = vld [vmem:[%s232_s30 + $0x40] sm:$0xff] (%p3228_p3)  ;;  %267 = vst [vmem:[%s228_s9] sm:$0xff] (%p3228_p3), %v266_v0  ;;  %269 = vst [vmem:[%s228_s9 + $0x8] sm:$0xff] (%p3228_p3), %v268_v1  ;;  %v272_v3 = vld [vmem:[%s232_s30 + $0x50] sm:$0xff] (%p3228_p3) }
  0x1f   : > { %271 = vst [vmem:[%s228_s9 + $0x10] sm:$0xff] %v270_v2  ;;  %273 = vst [vmem:[%s228_s9 + $0x18] sm:$0xff] %v272_v3 }
  0x20 PF: > { %p1976_p12 = scmp.ge.s32.totalorder %s3138_s25, 1  ;;  %p278_p13 = scmp.lt.s32.totalorder %s3138_s25, 5 }
  0x22   : > { %p279_p0 = pnand %p1976_p12, %p278_p13 }
  0x23   : > { %s3262_s6 = sand.u32 (!%p279_p0), 1, %s3114_s19   ;;  %v343_v4 = vlaneseq (!%p279_p0)  ;;  %p325_p1 = scmp.lt.s32.totalorder (!%p279_p0), %s3126_s22, 1  ;;  %v3140_v21 = vmov (!%p279_p0), 1.0|1.0  }
  0x24   : > { %282 = sbr.rel (%p279_p0) target bundleno = 695 (0x2b7), region = 74  ;;  %s1977_s10 = sshll.u32 (!%p279_p0), %s3262_s6, 5 }
  0x25   : > { %v3266_v5 = vshrl.u32 (!%p279_p0), %v343_v4, 7  ;;  %s3268_s11 = scalar_lea.vmem (!%p279_p0), [#allocation2], %s1977_s10  ;;  %p332_p2 = scmp.lt.s32.totalorder (!%p279_p0), %s3122_s21, 1 }
  0x26   : > { %v3271_v6 = vld [vmem:[%s3268_s11] sm:$0xff] (!%p279_p0)  ;;  %v342_v38 = vld [vmem:[%s3268_s11 + $0x8] sm:$0x3] (!%p279_p0)  ;;  %s2626_s11 = sshll.u32 (!%p279_p0), %s3126_s22, 2  ;;  %s3142_s9 = smov (!%p279_p0), [#allocation3]  }
  0x27   : > { %v3277_v7 = vadd.s32 (!%p279_p0), 8, %v3266_v5  ;;  %v478_v8 = vsub.s32 (!%p279_p0), 1, %v3266_v5  ;;  %v378_v9 = vsub.s32 (!%p279_p0), 0, %v3266_v5  ;;  %v750_v10 = vsub.s32 (!%p279_p0), 3, %v3266_v5  ;;  %s3048_s10 = sshll.u32 (!%p279_p0), %s3142_s9, 4  ;;  %s3049_s10 = int_to_ptr.vmem [resolvable:$false] %s3048_s10 }
  0x28   : > { %v3283_v11 = vadd.s32 (!%p279_p0), 16, %v3266_v5  ;;  %v3286_v12 = vadd.s32 (!%p279_p0), 24, %v3266_v5  ;;  %v650_v13 = vsub.s32 (!%p279_p0), 2, %v3266_v5  ;;  %v3312_v18 = vadd.s32 (!%p279_p0), 32, %v3266_v5 }
  0x29   : > { %v3293_v14 = vrot.slane (!%p279_p0), %v3271_v6, %v478_v8  ;;  %v3298_v15 = vrot.slane (!%p279_p0), %v3271_v6, %v378_v9  ;;  %v3301_v16 = vrot.slane (!%p279_p0), %v3271_v6, %v750_v10  ;;  %v3315_v19 = vadd.s32 (!%p279_p0), 40, %v3266_v5 }
  0x2a   : > { %v3309_v17 = vrot.slane (!%p279_p0), %v3271_v6, %v650_v13  ;;  %v3359_v22 = vadd.s32 (!%p279_p0), 48, %v3266_v5  ;;  %v3362_v23 = vadd.s32 (!%p279_p0), 56, %v3266_v5  ;;  %v3385_v24 = vadd.s32 (!%p279_p0), 64, %v3266_v5 }
  0x2b   : > { %s3274_s13 = scalar_select %p325_p1, %s3126_s22, 1  ;;  %vm480_vm0 = vcmp.eq.s32.totalorder %v3266_v5, %v3293_v14  ;;  %vm481_vm1 = vcmp.eq.s32.totalorder %v3277_v7, %v3293_v14  ;;  %vm380_vm2 = vcmp.eq.s32.totalorder %v3266_v5, %v3298_v15  ;;  %vm381_vm3 = vcmp.eq.s32.totalorder %v3277_v7, %v3298_v15 }
  0x2c   : > { %vm2642_vm4 = vmpackc.low %vm481_vm1, %vm480_vm0  ;;  %vm752_vm5 = vcmp.eq.s32.totalorder %v3266_v5, %v3301_v16  ;;  %vm753_vm6 = vcmp.eq.s32.totalorder %v3277_v7, %v3301_v16  ;;  %vm482_vm7 = vcmp.eq.s32.totalorder %v3283_v11, %v3293_v14  ;;  %vm483_vm8 = vcmp.eq.s32.totalorder %v3286_v12, %v3293_v14 }
  0x2d   : > { %s2630_s14 = sshll.u32 %s3274_s13, 4  ;;  %2643 = vmatprep.subr.msk.bf16.mxu0 %vm2642_vm4, %v3140_v21  ;;  %vm2644_vm9 = vmpackc.low %vm381_vm3, %vm380_vm2  ;;  %vm652_vm10 = vcmp.eq.s32.totalorder %v3266_v5, %v3309_v17  ;;  %vm653_vm11 = vcmp.eq.s32.totalorder %v3277_v7, %v3309_v17  ;;  %vm382_vm13 = vcmp.eq.s32.totalorder %v3283_v11, %v3298_v15  ;;  %vm383_vm14 = vcmp.eq.s32.totalorder %v3286_v12, %v3298_v15  ;;  %s1981_s15 = sshll.u32 %s3274_s13, 1 }
  0x2e   : > { %s3306_s17 = scalar_lea.vmem %s5008_s0, %s2630_s14  ;;  %2645 = vmatpush1.bf16.msk.msra.mxu0 %vm2644_vm9, %v3140_v21  ;;  %vm2706_vm12 = vmpackc.low %vm753_vm6, %vm752_vm5  ;;  %vm754_vm0 = vcmp.eq.s32.totalorder %v3283_v11, %v3301_v16  ;;  %vm755_vm1 = vcmp.eq.s32.totalorder %v3286_v12, %v3301_v16  ;;  %vm484_vm3 = vcmp.eq.s32.totalorder %v3312_v18, %v3293_v14  ;;  %vm485_vm4 = vcmp.eq.s32.totalorder %v3315_v19, %v3293_v14  ;;  %s1978_s13 = sshll.u32 %s3262_s6, 4 }
  0x2f   : > { %v3318_v20 = vld [vmem:[%s3306_s17 + $0x8] sm:$0xff]  ;;  %2707 = vmatprep.subr.msk.bf16.mxu1 %vm2706_vm12, %v3140_v21  ;;  %vm2646_vm15 = vmpackc.low %vm483_vm8, %vm482_vm7  ;;  %vm654_vm6 = vcmp.eq.s32.totalorder %v3283_v11, %v3309_v17  ;;  %vm655_vm7 = vcmp.eq.s32.totalorder %v3286_v12, %v3309_v17  ;;  %vm384_vm9 = vcmp.eq.s32.totalorder %v3312_v18, %v3298_v15  ;;  %vm756_vm12 = vcmp.eq.s32.totalorder %v3312_v18, %v3301_v16  ;;  %v3928_v59 = vld [vmem:[%s3306_s17] sm:$0xff]  ;;  %s333_s14 = scalar_select %p332_p2, %s3122_s21, 1 }
  0x30   : > { %640 = vmatprep.mubr.f32.mxu0 %v3318_v20  ;;  %912 = vmatprep.mubr.f32.mxu1 %v3318_v20  ;;  %vm2708_vm2 = vmpackc.low %vm653_vm11, %vm652_vm10  ;;  %vm385_vm10 = vcmp.eq.s32.totalorder %v3315_v19, %v3298_v15  ;;  %v3388_v25 = vadd.s32 72, %v3266_v5  ;;  %v3411_v26 = vadd.s32 80, %v3266_v5  ;;  %v3414_v27 = vadd.s32 88, %v3266_v5  ;;  %v3043_v61 = vld [vmem:[%s3306_s17 + $0x8] sm:$0xff] }
  0x31   : > { %2647 = vmatprep.subr.msk.bf16.mxu0 %vm2646_vm15, %v3140_v21  ;;  %2709 = vmatpush1.bf16.msk.msra.mxu1 %vm2708_vm2, %v3140_v21  ;;  %vm2648_vm5 = vmpackc.low %vm383_vm14, %vm382_vm13  ;;  %vm757_vm13 = vcmp.eq.s32.totalorder %v3315_v19, %v3301_v16  ;;  %vm486_vm15 = vcmp.eq.s32.totalorder %v3359_v22, %v3293_v14  ;;  %vm656_vm2 = vcmp.eq.s32.totalorder %v3312_v18, %v3309_v17  ;;  %v3437_v28 = vadd.s32 96, %v3266_v5  ;;  %s335_s16 = sadd.s32 %s1981_s15, %s333_s14  ;;  %s1853_s14 = sadd.s32 %s3122_s21, %s2626_s11 }
  0x32   : > { %2649 = vmatpush1.bf16.msk.msra.mxu0 %vm2648_vm5, %v3140_v21  ;;  %vm2710_vm8 = vmpackc.low %vm755_vm1, %vm754_vm0  ;;  %vm487_vm0 = vcmp.eq.s32.totalorder %v3362_v23, %v3293_v14  ;;  %vm386_vm5 = vcmp.eq.s32.totalorder %v3359_v22, %v3298_v15  ;;  %v3440_v29 = vadd.s32 104, %v3266_v5  ;;  %v3463_v30 = vadd.s32 112, %v3266_v5  ;;  %s1982_s17 = sshll.u32 %s335_s16, 3  ;;  %s324_s15 = scalar_lea.vmem [#allocation3], %s1978_s13 }
  0x33   : > { %2711 = vmatprep.subr.msk.bf16.mxu1 %vm2710_vm8, %v3140_v21  ;;  %vm2650_vm11 = vmpackc.low %vm485_vm4, %vm484_vm3  ;;  %vm657_vm3 = vcmp.eq.s32.totalorder %v3315_v19, %v3309_v17  ;;  %vm758_vm8 = vcmp.eq.s32.totalorder %v3359_v22, %v3301_v16  ;;  %v3466_v31 = vadd.s32 120, %v3266_v5  ;;  %v3489_v32 = vadd.s32 128, %v3266_v5  ;;  %s337_s30 = scalar_lea.vmem %s5009_s1, %s1982_s17  ;;  %s1856_s16 = sshll.u32 %s324_s15, 4  ;;  %s4949_s16 = int_to_ptr.vmem [resolvable:$true] %s1856_s16 }
  0x34   : > { %2651 = vmatprep.subr.msk.bf16.mxu0 %vm2650_vm11, %v3140_v21  ;;  %vm2712_vm14 = vmpackc.low %vm655_vm7, %vm654_vm6  ;;  %vm387_vm6 = vcmp.eq.s32.totalorder %v3362_v23, %v3298_v15  ;;  %vm488_vm11 = vcmp.eq.s32.totalorder %v3385_v24, %v3293_v14  ;;  %v3492_v33 = vadd.s32 136, %v3266_v5  ;;  %v3515_v34 = vadd.s32 144, %v3266_v5  ;;  %s2627_s17 = sshll.u32 %s1853_s14, 7  ;;  %s1842_s21 = scalar_lea.sflag [#allocation4], %s3262_s6 }
  0x35   : > { %2713 = vmatpush1.bf16.msk.msra.mxu1 %vm2712_vm14, %v3140_v21  ;;  %vm2652_vm1 = vmpackc.low %vm385_vm10, %vm384_vm9  ;;  %vm759_vm9 = vcmp.eq.s32.totalorder %v3362_v23, %v3301_v16  ;;  %vm658_vm14 = vcmp.eq.s32.totalorder %v3359_v22, %v3309_v17  ;;  %v3518_v35 = vadd.s32 152, %v3266_v5  ;;  %v3541_v36 = vadd.s32 160, %v3266_v5  ;;  %s4954_s22 = scalar_lea.hbm %s5013_s5, %s2627_s17  ;;  %s3050_s13 = scalar_lea.vmem %s3049_s10, 512 }
  0x36   : > { %2653 = vmatpush1.bf16.msk.msra.mxu0 %vm2652_vm1, %v3140_v21  ;;  %vm2714_vm4 = vmpackc.low %vm757_vm13, %vm756_vm12  ;;  %vm489_vm12 = vcmp.eq.s32.totalorder %v3388_v25, %v3293_v14  ;;  %vm388_vm1 = vcmp.eq.s32.totalorder %v3385_v24, %v3298_v15  ;;  %v3544_v37 = vadd.s32 168, %v3266_v5  ;;  %v3568_v39 = vadd.s32 176, %v3266_v5  ;;  %p3051_p6 = scmp.lt.s32.totalorder %s4949_s16, %s3049_s10 }
  0x37   : > { %2715 = vmatprep.subr.msk.bf16.mxu1 %vm2714_vm4, %v3140_v21  ;;  %vm2654_vm7 = vmpackc.low %vm487_vm0, %vm486_vm15  ;;  %vm659_vm15 = vcmp.eq.s32.totalorder %v3362_v23, %v3309_v17  ;;  %vm760_vm4 = vcmp.eq.s32.totalorder %v3385_v24, %v3301_v16  ;;  %v3571_v40 = vadd.s32 184, %v3266_v5  ;;  %v3585_v41 = vrot.slane %v342_v38, %v378_v9 }
  0x38   : > { %2655 = vmatprep.subr.msk.bf16.mxu0 %vm2654_vm7, %v3140_v21  ;;  %vm2716_vm10 = vmpackc.low %vm657_vm3, %vm656_vm2  ;;  %vm389_vm2 = vcmp.eq.s32.totalorder %v3388_v25, %v3298_v15  ;;  %vm490_vm7 = vcmp.eq.s32.totalorder %v3411_v26, %v3293_v14  ;;  %v3589_v42 = vrot.slane %v342_v38, %v478_v8  ;;  %v3600_v43 = vadd.s32 192, %v3266_v5 }
  0x39   : > { %2717 = vmatpush1.bf16.msk.msra.mxu1 %vm2716_vm10, %v3140_v21  ;;  %vm2656_vm13 = vmpackc.low %vm387_vm6, %vm386_vm5  ;;  %vm761_vm5 = vcmp.eq.s32.totalorder %v3388_v25, %v3301_v16  ;;  %vm660_vm10 = vcmp.eq.s32.totalorder %v3385_v24, %v3309_v17  ;;  %v3608_v44 = vadd.s32 200, %v3266_v5  ;;  %v3624_v45 = vadd.s32 208, %v3266_v5 }
  0x3a   : > { %2657 = vmatpush1.bf16.msk.msra.mxu0 %vm2656_vm13, %v3140_v21  ;;  %vm2718_vm0 = vmpackc.low %vm759_vm9, %vm758_vm8  ;;  %vm491_vm8 = vcmp.eq.s32.totalorder %v3414_v27, %v3293_v14  ;;  %vm390_vm13 = vcmp.eq.s32.totalorder %v3411_v26, %v3298_v15  ;;  %v3634_v46 = vadd.s32 216, %v3266_v5  ;;  %v3657_v47 = vadd.s32 224, %v3266_v5 }
  0x3b   : > { %2719 = vmatprep.subr.msk.bf16.mxu1 %vm2718_vm0, %v3140_v21  ;;  %vm2658_vm3 = vmpackc.low %vm489_vm12, %vm488_vm11  ;;  %vm661_vm11 = vcmp.eq.s32.totalorder %v3388_v25, %v3309_v17  ;;  %vm762_vm0 = vcmp.eq.s32.totalorder %v3411_v26, %v3301_v16  ;;  %v3660_v48 = vadd.s32 232, %v3266_v5  ;;  %v1023_v49 = vsub.s32 5, %v3266_v5 }
  0x3c   : > { %2659 = vmatprep.subr.msk.bf16.mxu0 %vm2658_vm3, %v3140_v21  ;;  %vm2720_vm6 = vmpackc.low %vm659_vm15, %vm658_vm14  ;;  %vm391_vm14 = vcmp.eq.s32.totalorder %v3414_v27, %v3298_v15  ;;  %vm492_vm3 = vcmp.eq.s32.totalorder %v3437_v28, %v3293_v14  ;;  %v3703_v50 = vadd.s32 240, %v3266_v5  ;;  %v923_v51 = vsub.s32 4, %v3266_v5 }
  0x3d   : > { %2721 = vmatpush1.bf16.msk.msra.mxu1 %vm2720_vm6, %v3140_v21  ;;  %vm2660_vm9 = vmpackc.low %vm389_vm2, %vm388_vm1  ;;  %vm763_vm1 = vcmp.eq.s32.totalorder %v3414_v27, %v3301_v16  ;;  %vm662_vm6 = vcmp.eq.s32.totalorder %v3411_v26, %v3309_v17  ;;  %v1296_v52 = vsub.s32 7, %v3266_v5  ;;  %v3732_v53 = vadd.s32 248, %v3266_v5 }
  0x3e   : > { %2661 = vmatpush1.bf16.msk.msra.mxu0 %vm2660_vm9, %v3140_v21  ;;  %vm2722_vm12 = vmpackc.low %vm761_vm5, %vm760_vm4  ;;  %vm493_vm4 = vcmp.eq.s32.totalorder %v3440_v29, %v3293_v14  ;;  %vm392_vm9 = vcmp.eq.s32.totalorder %v3437_v28, %v3298_v15  ;;  %v1196_v54 = vsub.s32 6, %v3266_v5  ;;  %v3749_v55 = vrot.slane %v3271_v6, %v1023_v49 }
  0x3f   : > { %2723 = vmatprep.subr.msk.bf16.mxu1 %vm2722_vm12, %v3140_v21  ;;  %vm2662_vm15 = vmpackc.low %vm491_vm8, %vm490_vm7  ;;  %vm663_vm7 = vcmp.eq.s32.totalorder %v3414_v27, %v3309_v17  ;;  %vm764_vm12 = vcmp.eq.s32.totalorder %v3437_v28, %v3301_v16  ;;  %v3765_v56 = vrot.slane %v3271_v6, %v923_v51  ;;  %v3781_v57 = vrot.slane %v3271_v6, %v1296_v52 }
  0x40   : > { %2663 = vmatprep.subr.msk.bf16.mxu0 %vm2662_vm15, %v3140_v21  ;;  %vm2724_vm2 = vmpackc.low %vm661_vm11, %vm660_vm10  ;;  %vm393_vm10 = vcmp.eq.s32.totalorder %v3440_v29, %v3298_v15  ;;  %vm494_vm15 = vcmp.eq.s32.totalorder %v3463_v30, %v3293_v14  ;;  %v3797_v58 = vrot.slane %v3271_v6, %v1196_v54  ;;  %v5129_v6 = vmov 0 }
  0x41   : > { %2725 = vmatpush1.bf16.msk.msra.mxu1 %vm2724_vm2, %v3140_v21  ;;  %vm2664_vm5 = vmpackc.low %vm391_vm14, %vm390_vm13  ;;  %vm765_vm13 = vcmp.eq.s32.totalorder %v3440_v29, %v3301_v16  ;;  %vm664_vm2 = vcmp.eq.s32.totalorder %v3437_v28, %v3309_v17  ;;  %v5152_v13 = vmov 0 }
  0x42   : > { %2665 = vmatpush1.bf16.msk.msra.mxu0 %vm2664_vm5, %v3140_v21  ;;  %vm2726_vm8 = vmpackc.low %vm763_vm1, %vm762_vm0  ;;  %vm495_vm0 = vcmp.eq.s32.totalorder %v3466_v31, %v3293_v14  ;;  %vm394_vm5 = vcmp.eq.s32.totalorder %v3463_v30, %v3298_v15 }
  0x43   : > { %2727 = vmatprep.subr.msk.bf16.mxu1 %vm2726_vm8, %v3140_v21  ;;  %vm2666_vm11 = vmpackc.low %vm493_vm4, %vm492_vm3  ;;  %vm665_vm3 = vcmp.eq.s32.totalorder %v3440_v29, %v3309_v17  ;;  %vm766_vm8 = vcmp.eq.s32.totalorder %v3463_v30, %v3301_v16 }
  0x44   : > { %2667 = vmatprep.subr.msk.bf16.mxu0 %vm2666_vm11, %v3140_v21  ;;  %vm2728_vm14 = vmpackc.low %vm663_vm7, %vm662_vm6  ;;  %vm395_vm6 = vcmp.eq.s32.totalorder %v3466_v31, %v3298_v15  ;;  %vm496_vm11 = vcmp.eq.s32.totalorder %v3489_v32, %v3293_v14 }
  0x45   : > { %2729 = vmatpush1.bf16.msk.msra.mxu1 %vm2728_vm14, %v3140_v21  ;;  %vm2668_vm1 = vmpackc.low %vm393_vm10, %vm392_vm9  ;;  %vm767_vm9 = vcmp.eq.s32.totalorder %v3466_v31, %v3301_v16  ;;  %vm666_vm14 = vcmp.eq.s32.totalorder %v3463_v30, %v3309_v17 }
  0x46   : > { %2669 = vmatpush1.bf16.msk.msra.mxu0 %vm2668_vm1, %v3140_v21  ;;  %vm2730_vm4 = vmpackc.low %vm765_vm13, %vm764_vm12  ;;  %vm497_vm12 = vcmp.eq.s32.totalorder %v3492_v33, %v3293_v14  ;;  %vm396_vm1 = vcmp.eq.s32.totalorder %v3489_v32, %v3298_v15 }
  0x47   : > { %2731 = vmatprep.subr.msk.bf16.mxu1 %vm2730_vm4, %v3140_v21  ;;  %vm2670_vm7 = vmpackc.low %vm495_vm0, %vm494_vm15  ;;  %vm667_vm15 = vcmp.eq.s32.totalorder %v3466_v31, %v3309_v17  ;;  %vm768_vm4 = vcmp.eq.s32.totalorder %v3489_v32, %v3301_v16 }
  0x48   : > { %2671 = vmatprep.subr.msk.bf16.mxu0 %vm2670_vm7, %v3140_v21  ;;  %vm2732_vm10 = vmpackc.low %vm665_vm3, %vm664_vm2  ;;  %vm397_vm2 = vcmp.eq.s32.totalorder %v3492_v33, %v3298_v15  ;;  %vm498_vm7 = vcmp.eq.s32.totalorder %v3515_v34, %v3293_v14 }
  0x49   : > { %2733 = vmatpush1.bf16.msk.msra.mxu1 %vm2732_vm10, %v3140_v21  ;;  %vm2672_vm13 = vmpackc.low %vm395_vm6, %vm394_vm5  ;;  %vm769_vm5 = vcmp.eq.s32.totalorder %v3492_v33, %v3301_v16  ;;  %vm668_vm10 = vcmp.eq.s32.totalorder %v3489_v32, %v3309_v17 }
  0x4a   : > { %2673 = vmatpush1.bf16.msk.msra.mxu0 %vm2672_vm13, %v3140_v21  ;;  %vm2734_vm0 = vmpackc.low %vm767_vm9, %vm766_vm8  ;;  %vm499_vm8 = vcmp.eq.s32.totalorder %v3518_v35, %v3293_v14  ;;  %vm398_vm13 = vcmp.eq.s32.totalorder %v3515_v34, %v3298_v15 }
  0x4b   : > { %2735 = vmatprep.subr.msk.bf16.mxu1 %vm2734_vm0, %v3140_v21  ;;  %vm2674_vm3 = vmpackc.low %vm497_vm12, %vm496_vm11  ;;  %vm669_vm11 = vcmp.eq.s32.totalorder %v3492_v33, %v3309_v17  ;;  %vm770_vm0 = vcmp.eq.s32.totalorder %v3515_v34, %v3301_v16 }
  0x4c   : > { %2675 = vmatprep.subr.msk.bf16.mxu0 %vm2674_vm3, %v3140_v21  ;;  %vm2736_vm6 = vmpackc.low %vm667_vm15, %vm666_vm14  ;;  %vm399_vm14 = vcmp.eq.s32.totalorder %v3518_v35, %v3298_v15  ;;  %vm500_vm3 = vcmp.eq.s32.totalorder %v3541_v36, %v3293_v14 }
  0x4d   : > { %2737 = vmatpush1.bf16.msk.msra.mxu1 %vm2736_vm6, %v3140_v21  ;;  %vm2676_vm9 = vmpackc.low %vm397_vm2, %vm396_vm1  ;;  %vm771_vm1 = vcmp.eq.s32.totalorder %v3518_v35, %v3301_v16  ;;  %vm670_vm6 = vcmp.eq.s32.totalorder %v3515_v34, %v3309_v17 }
  0x4e   : > { %2677 = vmatpush1.bf16.msk.msra.mxu0 %vm2676_vm9, %v3140_v21  ;;  %vm2738_vm12 = vmpackc.low %vm769_vm5, %vm768_vm4  ;;  %vm501_vm4 = vcmp.eq.s32.totalorder %v3544_v37, %v3293_v14  ;;  %vm400_vm9 = vcmp.eq.s32.totalorder %v3541_v36, %v3298_v15 }
  0x4f   : > { %2739 = vmatprep.subr.msk.bf16.mxu1 %vm2738_vm12, %v3140_v21  ;;  %vm2678_vm15 = vmpackc.low %vm499_vm8, %vm498_vm7  ;;  %vm671_vm7 = vcmp.eq.s32.totalorder %v3518_v35, %v3309_v17  ;;  %vm772_vm12 = vcmp.eq.s32.totalorder %v3541_v36, %v3301_v16 }
  0x50   : > { %2679 = vmatprep.subr.msk.bf16.mxu0 %vm2678_vm15, %v3140_v21  ;;  %vm2740_vm2 = vmpackc.low %vm669_vm11, %vm668_vm10  ;;  %vm401_vm10 = vcmp.eq.s32.totalorder %v3544_v37, %v3298_v15  ;;  %vm502_vm15 = vcmp.eq.s32.totalorder %v3568_v39, %v3293_v14 }
  0x51   : > { %2741 = vmatpush1.bf16.msk.msra.mxu1 %vm2740_vm2, %v3140_v21  ;;  %vm2680_vm5 = vmpackc.low %vm399_vm14, %vm398_vm13  ;;  %vm773_vm13 = vcmp.eq.s32.totalorder %v3544_v37, %v3301_v16  ;;  %vm672_vm2 = vcmp.eq.s32.totalorder %v3541_v36, %v3309_v17 }
  0x52   : > { %2681 = vmatpush1.bf16.msk.msra.mxu0 %vm2680_vm5, %v3140_v21  ;;  %vm2742_vm8 = vmpackc.low %vm771_vm1, %vm770_vm0  ;;  %vm503_vm0 = vcmp.eq.s32.totalorder %v3571_v40, %v3293_v14  ;;  %vm402_vm5 = vcmp.eq.s32.totalorder %v3568_v39, %v3298_v15 }
  0x53   : > { %2743 = vmatprep.subr.msk.bf16.mxu1 %vm2742_vm8, %v3140_v21  ;;  %vm2682_vm11 = vmpackc.low %vm501_vm4, %vm500_vm3  ;;  %vm673_vm3 = vcmp.eq.s32.totalorder %v3544_v37, %v3309_v17  ;;  %vm774_vm8 = vcmp.eq.s32.totalorder %v3568_v39, %v3301_v16 }
  0x54   : > { %2683 = vmatprep.subr.msk.bf16.mxu0 %vm2682_vm11, %v3140_v21  ;;  %vm2744_vm14 = vmpackc.low %vm671_vm7, %vm670_vm6  ;;  %vm403_vm6 = vcmp.eq.s32.totalorder %v3571_v40, %v3298_v15 }
  0x55   : > { %2745 = vmatpush1.bf16.msk.msra.mxu1 %vm2744_vm14, %v3140_v21  ;;  %vm2684_vm1 = vmpackc.low %vm401_vm10, %vm400_vm9  ;;  %vm775_vm9 = vcmp.eq.s32.totalorder %v3571_v40, %v3301_v16  ;;  %vm504_vm10 = vcmp.eq.s32.totalorder %v3600_v43, %v3293_v14  ;;  %vm675_vm14 = vcmp.eq.s32.totalorder %v3571_v40, %v3309_v17 }
  0x56   : > { %2685 = vmatpush1.bf16.msk.msra.mxu0 %vm2684_vm1, %v3140_v21  ;;  %vm2746_vm4 = vmpackc.low %vm773_vm13, %vm772_vm12  ;;  %vm505_vm12 = vcmp.eq.s32.totalorder %v3608_v44, %v3293_v14  ;;  %vm674_vm13 = vcmp.eq.s32.totalorder %v3568_v39, %v3309_v17  ;;  %vm405_vm1 = vcmp.eq.s32.totalorder %v3608_v44, %v3298_v15 }
  0x57   : > { %2747 = vmatprep.subr.msk.bf16.mxu1 %vm2746_vm4, %v3140_v21  ;;  %vm2686_vm7 = vmpackc.low %vm503_vm0, %vm502_vm15  ;;  %vm404_vm15 = vcmp.eq.s32.totalorder %v3600_v43, %v3298_v15  ;;  %vm777_vm4 = vcmp.eq.s32.totalorder %v3608_v44, %v3301_v16 }
  0x58   : > { %2687 = vmatprep.subr.msk.bf16.mxu0 %vm2686_vm7, %v3140_v21  ;;  %vm2748_vm11 = vmpackc.low %vm673_vm3, %vm672_vm2  ;;  %vm776_vm2 = vcmp.eq.s32.totalorder %v3600_v43, %v3301_v16  ;;  %vm677_vm7 = vcmp.eq.s32.totalorder %v3608_v44, %v3309_v17 }
  0x59   : > { %2749 = vmatpush1.bf16.msk.msra.mxu1 %vm2748_vm11, %v3140_v21  ;;  %vm2688_vm0 = vmpackc.low %vm403_vm6, %vm402_vm5  ;;  %vm506_vm5 = vcmp.eq.s32.totalorder %v3624_v45, %v3293_v14  ;;  %vm676_vm6 = vcmp.eq.s32.totalorder %v3600_v43, %v3309_v17  ;;  %vm406_vm11 = vcmp.eq.s32.totalorder %v3624_v45, %v3298_v15 }
  0x5a   : > { %2689 = vmatpush1.bf16.msk.msra.mxu0 %vm2688_vm0, %v3140_v21  ;;  %vm2750_vm3 = vmpackc.low %vm775_vm9, %vm774_vm8  ;;  %vm507_vm9 = vcmp.eq.s32.totalorder %v3634_v46, %v3293_v14  ;;  %vm778_vm0 = vcmp.eq.s32.totalorder %v3624_v45, %v3301_v16 }
  0x5b   : > { %2751 = vmatprep.subr.msk.bf16.mxu1 %vm2750_vm3, %v3140_v21  ;;  %vm2690_vm8 = vmpackc.low %vm505_vm12, %vm504_vm10  ;;  %vm407_vm12 = vcmp.eq.s32.totalorder %v3634_v46, %v3298_v15  ;;  %vm678_vm3 = vcmp.eq.s32.totalorder %v3624_v45, %v3309_v17 }
  0x5c   : > { %2691 = vmatprep.subr.msk.bf16.mxu0 %vm2690_vm8, %v3140_v21  ;;  %vm2752_vm10 = vmpackc.low %vm675_vm14, %vm674_vm13  ;;  %vm508_vm14 = vcmp.eq.s32.totalorder %v3657_v47, %v3293_v14  ;;  %vm509_vm8 = vcmp.eq.s32.totalorder %v3660_v48, %v3293_v14 }
  0x5d   : > { %2753 = vmatpush1.bf16.msk.msra.mxu1 %vm2752_vm10, %v3140_v21  ;;  %vm2692_vm13 = vmpackc.low %vm405_vm1, %vm404_vm15  ;;  %vm679_vm1 = vcmp.eq.s32.totalorder %v3634_v46, %v3309_v17  ;;  %vm1198_vm10 = vcmp.eq.s32.totalorder %v3266_v5, %v3797_v58 }
  0x5e   : > { %2693 = vmatpush1.bf16.msk.msra.mxu0 %vm2692_vm13, %v3140_v21  ;;  %vm2754_vm15 = vmpackc.low %vm777_vm4, %vm776_vm2  ;;  %vm409_vm4 = vcmp.eq.s32.totalorder %v3660_v48, %v3298_v15  ;;  %vm780_vm13 = vcmp.eq.s32.totalorder %v3657_v47, %v3301_v16 }
  0x5f   : > { %2755 = vmatprep.subr.msk.bf16.mxu1 %vm2754_vm15, %v3140_v21  ;;  %vm2694_vm2 = vmpackc.low %vm507_vm9, %vm506_vm5  ;;  %vm510_vm9 = vcmp.eq.s32.totalorder %v3703_v50, %v3293_v14  ;;  %vm680_vm15 = vcmp.eq.s32.totalorder %v3657_v47, %v3309_v17 }
  0x60   : > { %2695 = vmatprep.subr.msk.bf16.mxu0 %vm2694_vm2, %v3140_v21  ;;  %vm2756_vm5 = vmpackc.low %vm677_vm7, %vm676_vm6  ;;  %vm410_vm7 = vcmp.eq.s32.totalorder %v3703_v50, %v3298_v15  ;;  %vm1035_vm2 = vcmp.eq.s32.totalorder %v3411_v26, %v3749_v55 }
  0x61   : > { %2757 = vmatpush1.bf16.msk.msra.mxu1 %vm2756_vm5, %v3140_v21  ;;  %vm2696_vm6 = vmpackc.low %vm407_vm12, %vm406_vm11  ;;  %vm5017_vm11 = vcmp.eq.s32.totalorder %v3634_v46, %v3301_v16  ;;  %vm511_vm5 = vcmp.eq.s32.totalorder %v3732_v53, %v3293_v14 }
  0x62   : > { %2697 = vmatpush1.bf16.msk.msra.mxu0 %vm2696_vm6, %v3140_v21  ;;  %vm2758_vm12 = vmpackc.low %vm5017_vm11, %vm778_vm0  ;;  %vm683_vm6 = vcmp.eq.s32.totalorder %v3732_v53, %v3309_v17  ;;  %vm1025_vm11 = vcmp.eq.s32.totalorder %v3266_v5, %v3749_v55 }
  0x63   : > { %2759 = vmatprep.subr.msk.bf16.mxu1 %vm2758_vm12, %v3140_v21  ;;  %vm2698_vm0 = vmpackc.low %vm509_vm8, %vm508_vm14  ;;  %vm1299_vm12 = vcmp.eq.s32.totalorder %v3277_v7, %v3781_v57 }
  0x64   : > { %2699 = vmatprep.subr.msk.bf16.mxu0 %vm2698_vm0, %v3140_v21  ;;  %vm2760_vm14 = vmpackc.low %vm679_vm1, %vm678_vm3  ;;  %vm5018_vm0 = vcmp.eq.s32.totalorder %v3657_v47, %v3298_v15  ;;  %vm1298_vm1 = vcmp.eq.s32.totalorder %v3266_v5, %v3781_v57 }
  0x65   : > { %2761 = vmatpush1.bf16.msk.msra.mxu1 %vm2760_vm14, %v3140_v21  ;;  %vm2700_vm3 = vmpackc.low %vm409_vm4, %vm5018_vm0  ;;  %vm5019_vm4 = vcmp.eq.s32.totalorder %v3660_v48, %v3301_v16  ;;  %vm1300_vm14 = vcmp.eq.s32.totalorder %v3283_v11, %v3781_v57 }
  0x66   : > { %2701 = vmatpush1.bf16.msk.msra.mxu0 %vm2700_vm3, %v3140_v21  ;;  %vm2762_vm0 = vmpackc.low %vm5019_vm4, %vm780_vm13  ;;  %vm1029_vm3 = vcmp.eq.s32.totalorder %v3312_v18, %v3749_v55  ;;  %vm5026_vm4 = vcmp.eq.s32.totalorder %v3266_v5, %v3765_v56 }
  0x67   : > { %2763 = vmatprep.subr.msk.bf16.mxu1 %vm2762_vm0, %v3140_v21  ;;  %vm2702_vm13 = vmpackc.low %vm511_vm5, %vm510_vm9  ;;  %vm5020_vm9 = vcmp.eq.s32.totalorder %v3660_v48, %v3309_v17  ;;  %vm929_vm0 = vcmp.eq.s32.totalorder %v3312_v18, %v3765_v56 }
  0x68   : > { %2703 = vmatprep.subr.msk.bf16.mxu0 %vm2702_vm13, %v3140_v21  ;;  %vm2764_vm5 = vmpackc.low %vm5020_vm9, %vm680_vm15  ;;  %vm5021_vm15 = vcmp.eq.s32.totalorder %v3732_v53, %v3298_v15 }
  0x69   : > { %2765 = vmatpush1.bf16.msk.msra.mxu1 %vm2764_vm5, %v3140_v21  ;;  %vm2704_vm9 = vmpackc.low %vm5021_vm15, %vm410_vm7  ;;  %vm5022_vm7 = vcmp.eq.s32.totalorder %v3703_v50, %v3301_v16  ;;  %vm5023_vm15 = vcmp.eq.s32.totalorder %v3732_v53, %v3301_v16  ;;  %v5164_v16 = vmov 0 }
  0x6a   : > { %2705 = vmatpush1.bf16.msk.msra.mxu0 %vm2704_vm9, %v3140_v21  ;;  %vm2766_vm13 = vmpackc.low %vm5023_vm15, %vm5022_vm7  ;;  %vm5024_vm15 = vcmp.eq.s32.totalorder %v3703_v50, %v3309_v17  ;;  %vm5029_vm9 = vcmp.eq.s32.totalorder %v3286_v12, %v3749_v55  ;;  %vm931_vm7 = vcmp.eq.s32.totalorder %v3359_v22, %v3765_v56  ;;  %v5168_v17 = vmov 0 }
  0x6b   : > { %2767 = vmatprep.subr.msk.bf16.mxu1 %vm2766_vm13, %v3140_v21  ;;  %vm2768_vm5 = vmpackc.low %vm683_vm6, %vm5024_vm15  ;;  %vm5025_vm6 = vcmp.eq.s32.totalorder %v3277_v7, %v3749_v55  ;;  %vm1303_vm13 = vcmp.eq.s32.totalorder %v3315_v19, %v3781_v57 }
  0x6c   : > { %vm2770_vm15 = vmpackc.low %vm5025_vm6, %vm1025_vm11  ;;  %vm5027_vm11 = vcmp.eq.s32.totalorder %v3277_v7, %v3765_v56 }
  0x6d   : > { %641 = vmatmul.mubr.f32.vlgmr.msra.gmra.mrb[0].mxu0 %v3928_v59  ;;  %2769 = vmatpush1.bf16.msk.msra.mxu1 %vm2768_vm5, %v3140_v21  ;;  %vm2772_vm6 = vmpackc.low %vm5027_vm11, %vm5026_vm4  ;;  %vm5028_vm5 = vcmp.eq.s32.totalorder %v3283_v11, %v3749_v55  ;;  %vm933_vm11 = vcmp.eq.s32.totalorder %v3385_v24, %v3765_v56  ;;  %vm934_vm4 = vcmp.eq.s32.totalorder %v3388_v25, %v3765_v56 }
  0x6e   : > { %2771 = vmatprep.subr.msk.bf16.mxu0 %vm2770_vm15, %v3140_v21  ;;  %vm2774_vm8 = vmpackc.low %vm5029_vm9, %vm5028_vm5  ;;  %1185 = vmatprep.mubr.f32.mxu0 %v3318_v20  ;;  %vm5040_vm5 = vcmp.eq.s32.totalorder %v3359_v22, %v3749_v55  ;;  %vm1034_vm15 = vcmp.eq.s32.totalorder %v3388_v25, %v3749_v55 }
  0x6f   : > { %2773 = vmatpush1.bf16.msk.msra.mxu0 %vm2772_vm6, %v3140_v21  ;;  %vm2834_vm9 = vmpackc.low %vm1299_vm12, %vm1298_vm1  ;;  %vm5030_vm6 = vcmp.eq.s32.totalorder %v3283_v11, %v3765_v56  ;;  %vm5031_vm12 = vcmp.eq.s32.totalorder %v3286_v12, %v3765_v56 }
  0x70   : > { %913 = vmatmul.mubr.f32.vlgmr.msra.gmra.mrb[0].mxu1 %v3928_v59  ;;  %2775 = vmatprep.subr.msk.bf16.mxu0 %vm2774_vm8, %v3140_v21  ;;  %vm4027_vm1 = vmpackc.low %vm5031_vm12, %vm5030_vm6  ;;  %vm5034_vm8 = vcmp.eq.s32.totalorder %v3277_v7, %v3797_v58  ;;  %vm1203_vm12 = vcmp.eq.s32.totalorder %v3315_v19, %v3797_v58 }
  0x71   : > { %2835 = vmatprep.subr.msk.bf16.mxu1 %vm2834_vm9, %v3140_v21  ;;  %vm2836_vm6 = vmpackc.low %vm5034_vm8, %vm1198_vm10  ;;  %vm5035_vm10 = vcmp.eq.s32.totalorder %v3315_v19, %v3749_v55  ;;  %1458 = vmatprep.mubr.f32.mxu1 %v3318_v20  ;;  %vm5041_vm8 = vcmp.eq.s32.totalorder %v3362_v23, %v3749_v55 }
  0x72   : > { %2837 = vmatpush1.bf16.msk.msra.mxu1 %vm2836_vm6, %v3140_v21  ;;  %vm2778_vm9 = vmpackc.low %vm5035_vm10, %vm1029_vm3  ;;  %vm5036_vm3 = vcmp.eq.s32.totalorder %v3286_v12, %v3781_v57 }
  0x73   : > { %2777 = vmatpush1.bf16.msk.msra.mxu0 %vm4027_vm1, %v3140_v21  ;;  %vm2838_vm6 = vmpackc.low %vm5036_vm3, %vm1300_vm14  ;;  %vm5037_vm14 = vcmp.eq.s32.totalorder %v3315_v19, %v3765_v56  ;;  %vm1302_vm3 = vcmp.eq.s32.totalorder %v3312_v18, %v3781_v57 }
  0x74   : > { %2779 = vmatprep.subr.msk.bf16.mxu0 %vm2778_vm9, %v3140_v21  ;;  %2839 = vmatprep.subr.msk.bf16.mxu1 %vm2838_vm6, %v3140_v21  ;;  %vm2780_vm1 = vmpackc.low %vm5037_vm14, %vm929_vm0  ;;  %vm5038_vm9 = vcmp.eq.s32.totalorder %v3283_v11, %v3797_v58  ;;  %vm5039_vm6 = vcmp.eq.s32.totalorder %v3286_v12, %v3797_v58  ;;  %vm932_vm0 = vcmp.eq.s32.totalorder %v3362_v23, %v3765_v56 }
  0x75   : > { %vm2840_vm10 = vmpackc.low %vm5039_vm6, %vm5038_vm9  ;;  %vm1202_vm6 = vcmp.eq.s32.totalorder %v3312_v18, %v3797_v58  ;;  %vm1033_vm14 = vcmp.eq.s32.totalorder %v3385_v24, %v3749_v55 }
  0x76   : > { %2841 = vmatpush1.bf16.msk.msra.mxu1 %vm2840_vm10, %v3140_v21  ;;  %vm2782_vm9 = vmpackc.low %vm5041_vm8, %vm5040_vm5  ;;  %vm1304_vm5 = vcmp.eq.s32.totalorder %v3359_v22, %v3781_v57  ;;  %vm1305_vm8 = vcmp.eq.s32.totalorder %v3362_v23, %v3781_v57 }
  0x77   : > { %2781 = vmatpush1.bf16.msk.msra.mxu0 %vm2780_vm1, %v3140_v21  ;;  %vm2842_vm10 = vmpackc.low %vm1303_vm13, %vm1302_vm3  ;;  %vm1204_vm1 = vcmp.eq.s32.totalorder %v3359_v22, %v3797_v58  ;;  %vm1209_vm3 = vcmp.eq.s32.totalorder %v3414_v27, %v3797_v58 }
  0x78   : > { %2783 = vmatprep.subr.msk.bf16.mxu0 %vm2782_vm9, %v3140_v21  ;;  %2843 = vmatprep.subr.msk.bf16.mxu1 %vm2842_vm10, %v3140_v21  ;;  %vm2784_vm13 = vmpackc.low %vm932_vm0, %vm931_vm7  ;;  %vm1036_vm10 = vcmp.eq.s32.totalorder %v3414_v27, %v3749_v55  ;;  %vm1206_vm7 = vcmp.eq.s32.totalorder %v3385_v24, %v3797_v58  ;;  %vm1039_vm0 = vcmp.eq.s32.totalorder %v3463_v30, %v3749_v55 }
  0x79   : > { %vm2844_vm9 = vmpackc.low %vm1203_vm12, %vm1202_vm6  ;;  %vm936_vm6 = vcmp.eq.s32.totalorder %v3414_v27, %v3765_v56 }
  0x7a   : > { %2845 = vmatpush1.bf16.msk.msra.mxu1 %vm2844_vm9, %v3140_v21  ;;  %vm2786_vm12 = vmpackc.low %vm1034_vm15, %vm1033_vm14  ;;  %vm1038_vm14 = vcmp.eq.s32.totalorder %v3440_v29, %v3749_v55  ;;  %vm1308_vm9 = vcmp.eq.s32.totalorder %v3411_v26, %v3781_v57 }
  0x7b   : > { %2785 = vmatpush1.bf16.msk.msra.mxu0 %vm2784_vm13, %v3140_v21  ;;  %vm2846_vm15 = vmpackc.low %vm1305_vm8, %vm1304_vm5  ;;  %vm938_vm8 = vcmp.eq.s32.totalorder %v3440_v29, %v3765_v56  ;;  %vm5047_vm13 = vcmp.eq.s32.totalorder %v3437_v28, %v3749_v55 }
  0x7c   : > { %2787 = vmatprep.subr.msk.bf16.mxu0 %vm2786_vm12, %v3140_v21  ;;  %2847 = vmatprep.subr.msk.bf16.mxu1 %vm2846_vm15, %v3140_v21  ;;  %vm2788_vm5 = vmpackc.low %vm934_vm4, %vm933_vm11  ;;  %vm5042_vm12 = vcmp.eq.s32.totalorder %v3362_v23, %v3797_v58  ;;  %vm1210_vm11 = vcmp.eq.s32.totalorder %v3437_v28, %v3797_v58  ;;  %vm942_vm4 = vcmp.eq.s32.totalorder %v3492_v33, %v3765_v56 }
  0x7d   : > { %vm2848_vm15 = vmpackc.low %vm5042_vm12, %vm1204_vm1  ;;  %vm1490_vm12 = vcmp.eq.s32.totalorder %v3518_v35, %v3585_v41 }
  0x7e   : > { %2849 = vmatpush1.bf16.msk.msra.mxu1 %vm2848_vm15, %v3140_v21  ;;  %vm2790_vm1 = vmpackc.low %vm1036_vm10, %vm1035_vm2  ;;  %vm5043_vm15 = vcmp.eq.s32.totalorder %v3385_v24, %v3781_v57  ;;  %vm5044_vm2 = vcmp.eq.s32.totalorder %v3388_v25, %v3781_v57 }
  0x7f   : > { %2789 = vmatpush1.bf16.msk.msra.mxu0 %vm2788_vm5, %v3140_v21  ;;  %vm2850_vm10 = vmpackc.low %vm5044_vm2, %vm5043_vm15  ;;  %vm5045_vm5 = vcmp.eq.s32.totalorder %v3411_v26, %v3765_v56  ;;  %vm1586_vm2 = vcmp.eq.s32.totalorder %v3466_v31, %v3589_v42 }
  0x80   : > { %2791 = vmatprep.subr.msk.bf16.mxu0 %vm2790_vm1, %v3140_v21  ;;  %2851 = vmatprep.subr.msk.bf16.mxu1 %vm2850_vm10, %v3140_v21  ;;  %vm2792_vm15 = vmpackc.low %vm936_vm6, %vm5045_vm5  ;;  %vm5046_vm1 = vcmp.eq.s32.totalorder %v3388_v25, %v3797_v58  ;;  %vm940_vm6 = vcmp.eq.s32.totalorder %v3466_v31, %v3765_v56  ;;  %vm5052_vm5 = vcmp.eq.s32.totalorder %v3437_v28, %v3781_v57 }
  0x81   : > { %vm2852_vm10 = vmpackc.low %vm5046_vm1, %vm1206_vm7  ;;  %vm941_vm1 = vcmp.eq.s32.totalorder %v3489_v32, %v3765_v56 }
  0x82   : > { %2853 = vmatpush1.bf16.msk.msra.mxu1 %vm2852_vm10, %v3140_v21  ;;  %vm2794_vm7 = vmpackc.low %vm1038_vm14, %vm5047_vm13  ;;  %vm5048_vm14 = vcmp.eq.s32.totalorder %v3414_v27, %v3781_v57  ;;  %vm1312_vm10 = vcmp.eq.s32.totalorder %v3463_v30, %v3781_v57 }
  0x83   : > { %2793 = vmatpush1.bf16.msk.msra.mxu0 %vm2792_vm15, %v3140_v21  ;;  %vm2854_vm13 = vmpackc.low %vm5048_vm14, %vm1308_vm9  ;;  %vm5049_vm15 = vcmp.eq.s32.totalorder %v3437_v28, %v3765_v56  ;;  %vm1041_vm14 = vcmp.eq.s32.totalorder %v3489_v32, %v3749_v55 }
  0x84   : > { %2795 = vmatprep.subr.msk.bf16.mxu0 %vm2794_vm7, %v3140_v21  ;;  %2855 = vmatprep.subr.msk.bf16.mxu1 %vm2854_vm13, %v3140_v21  ;;  %vm2796_vm9 = vmpackc.low %vm938_vm8, %vm5049_vm15  ;;  %vm5050_vm7 = vcmp.eq.s32.totalorder %v3411_v26, %v3797_v58  ;;  %vm1211_vm8 = vcmp.eq.s32.totalorder %v3440_v29, %v3797_v58 }
  0x85   : > { %vm2856_vm13 = vmpackc.low %vm1209_vm3, %vm5050_vm7  ;;  %vm5051_vm3 = vcmp.eq.s32.totalorder %v3466_v31, %v3749_v55 }
  0x86   : > { %2857 = vmatpush1.bf16.msk.msra.mxu1 %vm2856_vm13, %v3140_v21  ;;  %vm2798_vm7 = vmpackc.low %vm5051_vm3, %vm1039_vm0  ;;  %vm5053_vm13 = vcmp.eq.s32.totalorder %v3440_v29, %v3781_v57  ;;  %vm1042_vm0 = vcmp.eq.s32.totalorder %v3492_v33, %v3749_v55 }
  0x87   : > { %2797 = vmatpush1.bf16.msk.msra.mxu0 %vm2796_vm9, %v3140_v21  ;;  %vm2858_vm15 = vmpackc.low %vm5053_vm13, %vm5052_vm5  ;;  %vm5054_vm9 = vcmp.eq.s32.totalorder %v3463_v30, %v3765_v56  ;;  %vm1313_vm5 = vcmp.eq.s32.totalorder %v3466_v31, %v3781_v57 }
  0x88   : > { %2799 = vmatprep.subr.msk.bf16.mxu0 %vm2798_vm7, %v3140_v21  ;;  %2859 = vmatprep.subr.msk.bf16.mxu1 %vm2858_vm15, %v3140_v21  ;;  %vm2800_vm3 = vmpackc.low %vm940_vm6, %vm5054_vm9  ;;  %vm1212_vm7 = vcmp.eq.s32.totalorder %v3463_v30, %v3797_v58  ;;  %vm1213_vm6 = vcmp.eq.s32.totalorder %v3466_v31, %v3797_v58 }
  0x89   : > { %vm2860_vm13 = vmpackc.low %vm1211_vm8, %vm1210_vm11  ;;  %vm1314_vm8 = vcmp.eq.s32.totalorder %v3489_v32, %v3781_v57 }
  0x8a   : > { %2861 = vmatpush1.bf16.msk.msra.mxu1 %vm2860_vm13, %v3140_v21  ;;  %vm2802_vm15 = vmpackc.low %vm1042_vm0, %vm1041_vm14  ;;  %vm1315_vm14 = vcmp.eq.s32.totalorder %v3492_v33, %v3781_v57  ;;  %vm5055_vm13 = vcmp.eq.s32.totalorder %v3515_v34, %v3749_v55 }
  0x8b   : > { %2801 = vmatpush1.bf16.msk.msra.mxu0 %vm2800_vm3, %v3140_v21  ;;  %vm2862_vm9 = vmpackc.low %vm1313_vm5, %vm1312_vm10  ;;  %vm5056_vm10 = vcmp.eq.s32.totalorder %v3518_v35, %v3749_v55  ;;  %vm1214_vm5 = vcmp.eq.s32.totalorder %v3489_v32, %v3797_v58 }
  0x8c   : > { %2803 = vmatprep.subr.msk.bf16.mxu0 %vm2802_vm15, %v3140_v21  ;;  %2863 = vmatprep.subr.msk.bf16.mxu1 %vm2862_vm9, %v3140_v21  ;;  %vm2804_vm11 = vmpackc.low %vm942_vm4, %vm941_vm1  ;;  %vm1215_vm4 = vcmp.eq.s32.totalorder %v3492_v33, %v3797_v58  ;;  %vm5057_vm15 = vcmp.eq.s32.totalorder %v3515_v34, %v3765_v56 }
  0x8d   : > { %vm2864_vm0 = vmpackc.low %vm1213_vm6, %vm1212_vm7  ;;  %vm5058_vm7 = vcmp.eq.s32.totalorder %v3518_v35, %v3765_v56 }
  0x8e   : > { %2865 = vmatpush1.bf16.msk.msra.mxu1 %vm2864_vm0, %v3140_v21  ;;  %vm2806_vm3 = vmpackc.low %vm5056_vm10, %vm5055_vm13  ;;  %vm5059_vm0 = vcmp.eq.s32.totalorder %v3541_v36, %v3749_v55  ;;  %vm5062_vm13 = vcmp.eq.s32.totalorder %v3518_v35, %v3781_v57 }
  0x8f   : > { %2805 = vmatpush1.bf16.msk.msra.mxu0 %vm2804_vm11, %v3140_v21  ;;  %vm2866_vm1 = vmpackc.low %vm1315_vm14, %vm1314_vm8  ;;  %vm5060_vm11 = vcmp.eq.s32.totalorder %v3544_v37, %v3749_v55  ;;  %vm5061_vm14 = vcmp.eq.s32.totalorder %v3515_v34, %v3781_v57 }
  0x90   : > { %2807 = vmatprep.subr.msk.bf16.mxu0 %vm2806_vm3, %v3140_v21  ;;  %2867 = vmatprep.subr.msk.bf16.mxu1 %vm2866_vm1, %v3140_v21  ;;  %vm2808_vm6 = vmpackc.low %vm5058_vm7, %vm5057_vm15  ;;  %vm5063_vm3 = vcmp.eq.s32.totalorder %v3541_v36, %v3765_v56  ;;  %vm5065_vm1 = vcmp.eq.s32.totalorder %v3515_v34, %v3797_v58  ;;  %vm5066_vm15 = vcmp.eq.s32.totalorder %v3518_v35, %v3797_v58 }
  0x91   : > { %vm2868_vm9 = vmpackc.low %vm1215_vm4, %vm1214_vm5  ;;  %vm5064_vm5 = vcmp.eq.s32.totalorder %v3544_v37, %v3765_v56 }
  0x92   : > { %2869 = vmatpush1.bf16.msk.msra.mxu1 %vm2868_vm9, %v3140_v21  ;;  %vm2810_vm8 = vmpackc.low %vm5060_vm11, %vm5059_vm0  ;;  %vm5068_vm9 = vcmp.eq.s32.totalorder %v3571_v40, %v3749_v55  ;;  %vm5069_vm11 = vcmp.eq.s32.totalorder %v3541_v36, %v3781_v57 }
  0x93   : > { %2809 = vmatpush1.bf16.msk.msra.mxu0 %vm2808_vm6, %v3140_v21  ;;  %vm2870_vm10 = vmpackc.low %vm5062_vm13, %vm5061_vm14  ;;  %vm5067_vm6 = vcmp.eq.s32.totalorder %v3568_v39, %v3749_v55  ;;  %vm5071_vm13 = vcmp.eq.s32.totalorder %v3568_v39, %v3765_v56 }
  0x94   : > { %2811 = vmatprep.subr.msk.bf16.mxu0 %vm2810_vm8, %v3140_v21  ;;  %2871 = vmatprep.subr.msk.bf16.mxu1 %vm2870_vm10, %v3140_v21  ;;  %vm2812_vm4 = vmpackc.low %vm5064_vm5, %vm5063_vm3  ;;  %vm5070_vm8 = vcmp.eq.s32.totalorder %v3544_v37, %v3781_v57  ;;  %vm5072_vm10 = vcmp.eq.s32.totalorder %v3571_v40, %v3765_v56  ;;  %vm5073_vm5 = vcmp.eq.s32.totalorder %v3541_v36, %v3797_v58 }
  0x95   : > { %vm2872_vm7 = vmpackc.low %vm5066_vm15, %vm5065_vm1  ;;  %vm5075_vm15 = vcmp.eq.s32.totalorder %v3600_v43, %v3749_v55 }
  0x96   : > { %2873 = vmatpush1.bf16.msk.msra.mxu1 %vm2872_vm7, %v3140_v21  ;;  %vm2814_vm0 = vmpackc.low %vm5068_vm9, %vm5067_vm6  ;;  %vm5076_vm7 = vcmp.eq.s32.totalorder %v3608_v44, %v3749_v55  ;;  %vm5077_vm9 = vcmp.eq.s32.totalorder %v3568_v39, %v3781_v57 }
  0x97   : > { %2813 = vmatpush1.bf16.msk.msra.mxu0 %vm2812_vm4, %v3140_v21  ;;  %vm2874_vm14 = vmpackc.low %vm5070_vm8, %vm5069_vm11  ;;  %vm5074_vm4 = vcmp.eq.s32.totalorder %v3544_v37, %v3797_v58  ;;  %vm5079_vm8 = vcmp.eq.s32.totalorder %v3600_v43, %v3765_v56 }
  0x98   : > { %2815 = vmatprep.subr.msk.bf16.mxu0 %vm2814_vm0, %v3140_v21  ;;  %2875 = vmatprep.subr.msk.bf16.mxu1 %vm2874_vm14, %v3140_v21  ;;  %vm2816_vm3 = vmpackc.low %vm5072_vm10, %vm5071_vm13  ;;  %vm5078_vm0 = vcmp.eq.s32.totalorder %v3571_v40, %v3781_v57  ;;  %vm5080_vm14 = vcmp.eq.s32.totalorder %v3608_v44, %v3765_v56  ;;  %vm5081_vm10 = vcmp.eq.s32.totalorder %v3568_v39, %v3797_v58 }
  0x99   : > { %vm2876_vm1 = vmpackc.low %vm5074_vm4, %vm5073_vm5  ;;  %vm5083_vm4 = vcmp.eq.s32.totalorder %v3624_v45, %v3749_v55 }
  0x9a   : > { %2877 = vmatpush1.bf16.msk.msra.mxu1 %vm2876_vm1, %v3140_v21  ;;  %vm2818_vm6 = vmpackc.low %vm5076_vm7, %vm5075_vm15  ;;  %vm5084_vm1 = vcmp.eq.s32.totalorder %v3634_v46, %v3749_v55  ;;  %vm5085_vm7 = vcmp.eq.s32.totalorder %v3600_v43, %v3781_v57 }
  0x9b   : > { %2817 = vmatpush1.bf16.msk.msra.mxu0 %vm2816_vm3, %v3140_v21  ;;  %vm2878_vm11 = vmpackc.low %vm5078_vm0, %vm5077_vm9  ;;  %vm5082_vm3 = vcmp.eq.s32.totalorder %v3571_v40, %v3797_v58  ;;  %vm5087_vm0 = vcmp.eq.s32.totalorder %v3624_v45, %v3765_v56 }
  0x9c   : > { %2819 = vmatprep.subr.msk.bf16.mxu0 %vm2818_vm6, %v3140_v21  ;;  %2879 = vmatprep.subr.msk.bf16.mxu1 %vm2878_vm11, %v3140_v21  ;;  %vm2820_vm13 = vmpackc.low %vm5080_vm14, %vm5079_vm8  ;;  %vm5086_vm6 = vcmp.eq.s32.totalorder %v3608_v44, %v3781_v57  ;;  %vm5088_vm11 = vcmp.eq.s32.totalorder %v3634_v46, %v3765_v56  ;;  %vm5089_vm14 = vcmp.eq.s32.totalorder %v3600_v43, %v3797_v58 }
  0x9d   : > { %vm2880_vm5 = vmpackc.low %vm5082_vm3, %vm5081_vm10  ;;  %vm5091_vm3 = vcmp.eq.s32.totalorder %v3657_v47, %v3749_v55 }
  0x9e   : > { %2881 = vmatpush1.bf16.msk.msra.mxu1 %vm2880_vm5, %v3140_v21  ;;  %vm2822_vm15 = vmpackc.low %vm5084_vm1, %vm5083_vm4  ;;  %vm5092_vm5 = vcmp.eq.s32.totalorder %v3660_v48, %v3749_v55  ;;  %vm5093_vm1 = vcmp.eq.s32.totalorder %v3624_v45, %v3781_v57 }
  0x9f   : > { %2821 = vmatpush1.bf16.msk.msra.mxu0 %vm2820_vm13, %v3140_v21  ;;  %vm2882_vm9 = vmpackc.low %vm5086_vm6, %vm5085_vm7  ;;  %vm5090_vm13 = vcmp.eq.s32.totalorder %v3608_v44, %v3797_v58  ;;  %vm5095_vm6 = vcmp.eq.s32.totalorder %v3657_v47, %v3765_v56 }
  0xa0   : > { %2823 = vmatprep.subr.msk.bf16.mxu0 %vm2822_vm15, %v3140_v21  ;;  %2883 = vmatprep.subr.msk.bf16.mxu1 %vm2882_vm9, %v3140_v21  ;;  %vm2824_vm8 = vmpackc.low %vm5088_vm11, %vm5087_vm0  ;;  %vm5094_vm15 = vcmp.eq.s32.totalorder %v3634_v46, %v3781_v57  ;;  %vm5096_vm9 = vcmp.eq.s32.totalorder %v3660_v48, %v3765_v56  ;;  %vm5097_vm11 = vcmp.eq.s32.totalorder %v3624_v45, %v3797_v58 }
  0xa1   : > { %vm2884_vm10 = vmpackc.low %vm5090_vm13, %vm5089_vm14  ;;  %vm5099_vm13 = vcmp.eq.s32.totalorder %v3703_v50, %v3749_v55 }
  0xa2   : > { %2885 = vmatpush1.bf16.msk.msra.mxu1 %vm2884_vm10, %v3140_v21  ;;  %vm2826_vm4 = vmpackc.low %vm5092_vm5, %vm5091_vm3  ;;  %vm5100_vm10 = vcmp.eq.s32.totalorder %v3732_v53, %v3749_v55  ;;  %vm5101_vm5 = vcmp.eq.s32.totalorder %v3657_v47, %v3781_v57 }
  0xa3   : > { %2825 = vmatpush1.bf16.msk.msra.mxu0 %vm2824_vm8, %v3140_v21  ;;  %vm2886_vm7 = vmpackc.low %vm5094_vm15, %vm5093_vm1  ;;  %vm5098_vm8 = vcmp.eq.s32.totalorder %v3634_v46, %v3797_v58  ;;  %vm5103_vm15 = vcmp.eq.s32.totalorder %v3703_v50, %v3765_v56 }
  0xa4   : > { %2827 = vmatprep.subr.msk.bf16.mxu0 %vm2826_vm4, %v3140_v21  ;;  %2887 = vmatprep.subr.msk.bf16.mxu1 %vm2886_vm7, %v3140_v21  ;;  %vm2828_vm0 = vmpackc.low %vm5096_vm9, %vm5095_vm6  ;;  %vm5102_vm4 = vcmp.eq.s32.totalorder %v3660_v48, %v3781_v57  ;;  %vm5104_vm7 = vcmp.eq.s32.totalorder %v3732_v53, %v3765_v56  ;;  %vm1571_vm9 = vcmp.eq.s32.totalorder %v3266_v5, %v3589_v42 }
  0xa5   : > { %vm2888_vm14 = vmpackc.low %vm5098_vm8, %vm5097_vm11  ;;  %vm5105_vm11 = vcmp.eq.s32.totalorder %v3657_v47, %v3797_v58  ;;  %vm5106_vm8 = vcmp.eq.s32.totalorder %v3660_v48, %v3797_v58 }
  0xa6   : > { %2889 = vmatpush1.bf16.msk.msra.mxu1 %vm2888_vm14, %v3140_v21  ;;  %vm2830_vm3 = vmpackc.low %vm5100_vm10, %vm5099_vm13  ;;  %vm5107_vm13 = vcmp.eq.s32.totalorder %v3703_v50, %v3781_v57  ;;  %vm5108_vm10 = vcmp.eq.s32.totalorder %v3732_v53, %v3781_v57 }
  0xa7   : > { %2829 = vmatpush1.bf16.msk.msra.mxu0 %vm2828_vm0, %v3140_v21  ;;  %vm2890_vm1 = vmpackc.low %vm5102_vm4, %vm5101_vm5  ;;  %vm1572_vm0 = vcmp.eq.s32.totalorder %v3277_v7, %v3589_v42  ;;  %vm1471_vm5 = vcmp.eq.s32.totalorder %v3266_v5, %v3585_v41  ;;  %vm1472_vm4 = vcmp.eq.s32.totalorder %v3277_v7, %v3585_v41 }
  0xa8   : > { %2831 = vmatprep.subr.msk.bf16.mxu0 %vm2830_vm3, %v3140_v21  ;;  %2891 = vmatprep.subr.msk.bf16.mxu1 %vm2890_vm1, %v3140_v21  ;;  %vm2832_vm6 = vmpackc.low %vm5104_vm7, %vm5103_vm15  ;;  %vm1573_vm15 = vcmp.eq.s32.totalorder %v3283_v11, %v3589_v42  ;;  %vm1574_vm7 = vcmp.eq.s32.totalorder %v3286_v12, %v3589_v42 }
  0xa9   : > { %vm2892_vm14 = vmpackc.low %vm5106_vm8, %vm5105_vm11  ;;  %vm5109_vm11 = vcmp.eq.s32.totalorder %v3703_v50, %v3797_v58  ;;  %vm5110_vm8 = vcmp.eq.s32.totalorder %v3732_v53, %v3797_v58 }
  0xaa   : > { %2893 = vmatpush1.bf16.msk.msra.mxu1 %vm2892_vm14, %v3140_v21  ;;  %vm2894_vm3 = vmpackc.low %vm5108_vm10, %vm5107_vm13  ;;  %vm1473_vm13 = vcmp.eq.s32.totalorder %v3283_v11, %v3585_v41  ;;  %vm1575_vm10 = vcmp.eq.s32.totalorder %v3312_v18, %v3589_v42 }
  0xab   : > { %2833 = vmatpush1.bf16.msk.msra.mxu0 %vm2832_vm6, %v3140_v21  ;;  %2895 = vmatprep.subr.msk.bf16.mxu1 %vm2894_vm3, %v3140_v21  ;;  %vm2898_vm1 = vmpackc.low %vm1572_vm0, %vm1571_vm9  ;;  %vm1474_vm9 = vcmp.eq.s32.totalorder %v3286_v12, %v3585_v41  ;;  %vm1576_vm3 = vcmp.eq.s32.totalorder %v3315_v19, %v3589_v42 }
  0xac   : > { %2899 = vmatprep.subr.msk.bf16.mxu0 %vm2898_vm1, %v3140_v21  ;;  %vm2896_vm14 = vmpackc.low %vm5110_vm8, %vm5109_vm11  ;;  %vm1475_vm1 = vcmp.eq.s32.totalorder %v3312_v18, %v3585_v41  ;;  %vm1578_vm11 = vcmp.eq.s32.totalorder %v3362_v23, %v3589_v42  ;;  %vm1477_vm8 = vcmp.eq.s32.totalorder %v3359_v22, %v3585_v41  ;;  %v5172_v18 = vmov 0 }
  0xad   : > { %vm2900_vm6 = vmpackc.low %vm1472_vm4, %vm1471_vm5 }
  0xae   : > { %1186 = vmatmul.mubr.f32.vlgmr.msra.gmra.mrb[2].mxu0 %v3928_v59  ;;  %2897 = vmatpush1.bf16.msk.msra.mxu1 %vm2896_vm14, %v3140_v21  ;;  %vm2902_vm0 = vmpackc.low %vm1574_vm7, %vm1573_vm15  ;;  %vm1476_vm15 = vcmp.eq.s32.totalorder %v3315_v19, %v3585_v41  ;;  %vm1577_vm7 = vcmp.eq.s32.totalorder %v3359_v22, %v3589_v42  ;;  %vm1478_vm14 = vcmp.eq.s32.totalorder %v3362_v23, %v3585_v41  ;;  %v5176_v19 = vmov 0 }
  0xaf   : > { %2901 = vmatpush1.bf16.msk.msra.mxu0 %vm2900_vm6, %v3140_v21  ;;  %1731 = vmatprep.mubr.f32.mxu0 %v3043_v61  ;;  %vm2904_vm5 = vmpackc.low %vm1474_vm9, %vm1473_vm13  ;;  %vm1579_vm13 = vcmp.eq.s32.totalorder %v3385_v24, %v3589_v42  ;;  %vm1580_vm9 = vcmp.eq.s32.totalorder %v3388_v25, %v3589_v42 }
  0xb0   : > { %2903 = vmatprep.subr.msk.bf16.mxu0 %vm2902_vm0, %v3140_v21  ;;  %vm2906_vm4 = vmpackc.low %vm1576_vm3, %vm1575_vm10  ;;  %vm1479_vm10 = vcmp.eq.s32.totalorder %v3385_v24, %v3585_v41  ;;  %vm1480_vm3 = vcmp.eq.s32.totalorder %v3388_v25, %v3585_v41 }
  0xb1   : > { %1459 = vmatmul.mubr.f32.vlgmr.msra.gmra.mrb[2].mxu1 %v3928_v59  ;;  %vm2908_vm6 = vmpackc.low %vm1476_vm15, %vm1475_vm1  ;;  %vm1582_vm1 = vcmp.eq.s32.totalorder %v3414_v27, %v3589_v42 }
  0xb2   : > { %vm2910_vm0 = vmpackc.low %vm1578_vm11, %vm1577_vm7  ;;  %vm1481_vm7 = vcmp.eq.s32.totalorder %v3411_v26, %v3585_v41  ;;  %vm1482_vm11 = vcmp.eq.s32.totalorder %v3414_v27, %v3585_v41 }
  0xb3   : > { %2905 = vmatpush1.bf16.msk.msra.mxu0 %vm2904_vm5, %v3140_v21  ;;  %vm4638_vm5 = vmpackc.low %vm1478_vm14, %vm1477_vm8  ;;  %vm1583_vm14 = vcmp.eq.s32.totalorder %v3437_v28, %v3589_v42 }
  0xb4   : > { %2907 = vmatprep.subr.msk.bf16.mxu0 %vm2906_vm4, %v3140_v21  ;;  %vm1581_vm4 = vcmp.eq.s32.totalorder %v3411_v26, %v3589_v42  ;;  %vm4647_vm15 = vmpackc.low %vm1580_vm9, %vm1579_vm13  ;;  %vm1483_vm9 = vcmp.eq.s32.totalorder %v3437_v28, %v3585_v41 }
  0xb5   : > { %vm4656_vm8 = vmpackc.low %vm1480_vm3, %vm1479_vm10  ;;  %vm1585_vm3 = vcmp.eq.s32.totalorder %v3463_v30, %v3589_v42 }
  0xb6   : > { %vm4664_vm13 = vmpackc.low %vm1582_vm1, %vm1581_vm4 }
  0xb7   : > { %2909 = vmatpush1.bf16.msk.msra.mxu0 %vm2908_vm6, %v3140_v21  ;;  %vm1584_vm6 = vcmp.eq.s32.totalorder %v3440_v29, %v3589_v42  ;;  %vm4672_vm10 = vmpackc.low %vm1482_vm11, %vm1481_vm7  ;;  %vm1485_vm11 = vcmp.eq.s32.totalorder %v3463_v30, %v3585_v41  ;;  %v1741_v30 = vld [vmem:[%s5011_s3] sm:$0xff] }
  0xb8   : > { %2911 = vmatprep.subr.msk.bf16.mxu0 %vm2910_vm0, %v3140_v21  ;;  %vm1484_vm0 = vcmp.eq.s32.totalorder %v3440_v29, %v3585_v41  ;;  %vm4683_vm4 = vmpackc.low %vm1584_vm6, %vm1583_vm14  ;;  %vm1587_vm14 = vcmp.eq.s32.totalorder %v3489_v32, %v3589_v42  ;;  %vm5127_vm6 = vcmp.eq.s32.totalorder %v3515_v34, %v3589_v42 }
  0xb9   : > { %vm4690_vm1 = vmpackc.low %vm1484_vm0, %vm1483_vm9  ;;  %vm5131_vm0 = vcmp.eq.s32.totalorder %v3515_v34, %v3585_v41 }
  0xba   : > { %vm4694_vm7 = vmpackc.low %vm1586_vm2, %vm1585_vm3  ;;  %vm5128_vm2 = vcmp.eq.s32.totalorder %v3518_v35, %v3589_v42 }
  0xbb   : > { %2913 = vmatpush1.bf16.msk.msra.mxu0 %vm4638_vm5, %v3140_v21  ;;  %vm1486_vm5 = vcmp.eq.s32.totalorder %v3466_v31, %v3585_v41  ;;  %vm4712_vm9 = vmpackc.low %vm5128_vm2, %vm5127_vm6  ;;  %vm5137_vm2 = vcmp.eq.s32.totalorder %v3544_v37, %v3589_v42  ;;  %v3141_v31 = vmov 0  }
  0xbc   : > { %2915 = vmatprep.subr.msk.bf16.mxu0 %vm4647_vm15, %v3140_v21  ;;  %vm1588_vm15 = vcmp.eq.s32.totalorder %v3492_v33, %v3589_v42  ;;  %v5130_v6 = vsel %vm4712_vm9, 4294967295, %v5129_v6  ;;  %vm4725_vm3 = vmpackc.low %vm1490_vm12, %vm5131_vm0  ;;  %vm5146_vm0 = vcmp.eq.s32.totalorder %v3568_v39, %v3589_v42  ;;  %3042 = vset.pattern.permute.xlu0 %v3141_v31 }
  0xbd   : > { %vm4732_vm6 = vmpackc.low %vm1486_vm5, %vm1485_vm11  ;;  %vm5143_vm11 = vcmp.eq.s32.totalorder %v3544_v37, %v3585_v41 }
  0xbe   : > { %vm4746_vm12 = vmpackc.low %vm1588_vm15, %vm1587_vm14  ;;  %vm5150_vm15 = vcmp.eq.s32.totalorder %v3568_v39, %v3585_v41 }
  0xbf   : > { %2917 = vmatpush1.bf16.msk.msra.mxu0 %vm4656_vm8, %v3140_v21  ;;  %vm5136_vm8 = vcmp.eq.s32.totalorder %v3541_v36, %v3589_v42 }
  0xc0   : > { %2919 = vmatprep.subr.msk.bf16.mxu0 %vm4664_vm13, %v3140_v21  ;;  %vm4742_vm9 = vmpackc.low %vm5137_vm2, %vm5136_vm8  ;;  %vm5142_vm13 = vcmp.eq.s32.totalorder %v3541_v36, %v3585_v41  ;;  %vm5147_vm8 = vcmp.eq.s32.totalorder %v3571_v40, %v3589_v42  ;;  %vm5151_vm2 = vcmp.eq.s32.totalorder %v3571_v40, %v3585_v41 }
  0xc1   : > { %vm4756_vm5 = vmpackc.low %vm5143_vm11, %vm5142_vm13  ;;  %vm5154_vm11 = vcmp.eq.s32.totalorder %v3600_v43, %v3589_v42 }
  0xc2   : > { %vm4766_vm14 = vmpackc.low %vm5147_vm8, %vm5146_vm0  ;;  %vm5158_vm8 = vcmp.eq.s32.totalorder %v3600_v43, %v3585_v41 }
  0xc3   : > { %2921 = vmatpush1.bf16.msk.msra.mxu0 %vm4672_vm10, %v3140_v21  ;;  %vm4779_vm13 = vmpackc.low %vm5151_vm2, %vm5150_vm15  ;;  %vm5155_vm10 = vcmp.eq.s32.totalorder %v3608_v44, %v3589_v42  ;;  %vm5159_vm15 = vcmp.eq.s32.totalorder %v3608_v44, %v3585_v41  ;;  %v340_v44 = vld [vmem:[%s337_s30] sm:$0xff]  ;;  %s3044_s30 = scalar_lea.vmem %s4949_s16, 256 }
  0xc4   : > { %v5153_v13 = vsel %vm4779_vm13, 4294967295, %v5152_v13  ;;  %2923 = vmatprep.subr.msk.bf16.mxu0 %vm4683_vm4, %v3140_v21  ;;  %vm4792_vm0 = vmpackc.low %vm5155_vm10, %vm5154_vm11  ;;  %vm5162_vm4 = vcmp.eq.s32.totalorder %v3624_v45, %v3589_v42  ;;  %vm5163_vm13 = vcmp.eq.s32.totalorder %v3634_v46, %v3589_v42  ;;  %vm5166_vm10 = vcmp.eq.s32.totalorder %v3624_v45, %v3585_v41  ;;  %p3045_p3 = scmp.ne.s32.totalorder %s4949_s16, %s3044_s30  ;;  %p3052_p7 = scmp.lt.s32.totalorder %s3050_s13, %s3044_s30 }
  0xc5   : > { %vm4802_vm2 = vmpackc.low %vm5159_vm15, %vm5158_vm8  ;;  %vm5167_vm8 = vcmp.eq.s32.totalorder %v3634_v46, %v3585_v41 }
  0xc6   : > { %vm4812_vm11 = vmpackc.low %vm5163_vm13, %vm5162_vm4  ;;  %vm5170_vm13 = vcmp.eq.s32.totalorder %v3657_v47, %v3589_v42  ;;  %p3046_p4 = pnand %p3045_p3, %p3236_p8  ;;  %p3053_p10 = por %p3052_p7, %p3051_p6 }
  0xc7   : > { %v5165_v16 = vsel %vm4812_vm11, 4294967295, %v5164_v16  ;;  %2925 = vmatpush1.bf16.msk.msra.mxu0 %vm4690_vm1, %v3140_v21  ;;  %vm4825_vm15 = vmpackc.low %vm5167_vm8, %vm5166_vm10  ;;  %vm5171_vm1 = vcmp.eq.s32.totalorder %v3660_v48, %v3589_v42  ;;  %vm1487_vm10 = vcmp.eq.s32.totalorder %v3489_v32, %v3585_v41  ;;  %vm1488_vm8 = vcmp.eq.s32.totalorder %v3492_v33, %v3585_v41  ;;  %v1744_v32 = vld [vmem:[%s5012_s4 + $0x8] sm:$0xff] }
  0xc8   : > { %v5169_v17 = vsel %vm4825_vm15, 4294967295, %v5168_v17  ;;  %2927 = vmatprep.subr.msk.bf16.mxu0 %vm4694_vm7, %v3140_v21  ;;  %vm4838_vm4 = vmpackc.low %vm5171_vm1, %vm5170_vm13  ;;  %vm5174_vm15 = vcmp.eq.s32.totalorder %v3657_v47, %v3585_v41  ;;  %vm5175_vm7 = vcmp.eq.s32.totalorder %v3660_v48, %v3585_v41  ;;  %vm5178_vm13 = vcmp.eq.s32.totalorder %v3703_v50, %v3589_v42  ;;  %v1742_v48 = vld [vmem:[%s5011_s3 + $0x8] sm:$0xff]  ;;  %p3047_p5 = pneg %p3046_p4 }
  0xc9   : > { %v5173_v18 = vsel %vm4838_vm4, 4294967295, %v5172_v18  ;;  %vm4852_vm11 = vmpackc.low %vm5175_vm7, %vm5174_vm15  ;;  %vm5179_vm1 = vcmp.eq.s32.totalorder %v3732_v53, %v3589_v42  ;;  %vm5182_vm15 = vcmp.eq.s32.totalorder %v3703_v50, %v3585_v41  ;;  %vm5183_vm7 = vcmp.eq.s32.totalorder %v3732_v53, %v3585_v41 }
  0xca   : > { %v5177_v19 = vsel %vm4852_vm11, 4294967295, %v5176_v19  ;;  %vm4862_vm4 = vmpackc.low %vm5179_vm1, %vm5178_vm13  ;;  %p3054_p11 = pnand %p3053_p10, %p3047_p5 }
  0xcb   : > { %2929 = vmatpush1.bf16.msk.msra.mxu0 %vm4732_vm6, %v3140_v21  ;;  %vm4875_vm11 = vmpackc.low %vm5183_vm7, %vm5182_vm15  ;;  %vm5186_vm6 = vnez %v5130_v6 }
  0xcc   : > { %2931 = vmatprep.subr.msk.bf16.mxu0 %vm4746_vm12, %v3140_v21  ;;  %vm2932_vm13 = vmpackc.low %vm1488_vm8, %vm1487_vm10  ;;  %vm5187_vm12 = vnez %v5153_v13 }
  0xcf   : > { %2933 = vmatpush1.bf16.msk.msra.mxu0 %vm2932_vm13, %v3140_v21 }
  0xd0   : > { %2935 = vmatprep.subr.msk.bf16.mxu0 %vm5186_vm6, %v3140_v21 }
  0xd3   : > { %2937 = vmatpush1.bf16.msk.msra.mxu0 %vm4725_vm3, %v3140_v21  ;;  %vm5189_vm3 = vnez %v5169_v17 }
  0xd4   : > { %2939 = vmatprep.subr.msk.bf16.mxu0 %vm4742_vm9, %v3140_v21  ;;  %vm5188_vm9 = vnez %v5165_v16 }
  0xd7   : > { %2941 = vmatpush1.bf16.msk.msra.mxu0 %vm4756_vm5, %v3140_v21  ;;  %vm5190_vm5 = vnez %v5173_v18 }
  0xd8   : > { %2943 = vmatprep.subr.msk.bf16.mxu0 %vm4766_vm14, %v3140_v21  ;;  %vm5191_vm14 = vnez %v5177_v19 }
  0xdb   : > { %2945 = vmatpush1.bf16.msk.msra.mxu0 %vm5187_vm12, %v3140_v21 }
  0xdc   : > { %2947 = vmatprep.subr.msk.bf16.mxu0 %vm4792_vm0, %v3140_v21  ;;  %vm1755_vm0 = vcmask 130048  }
  0xdd   : > { %2639 = vmatprep.mubr.msk.f32.mxu1 %vm1755_vm0, %v1741_v30 }
  0xdf   : > { %2949 = vmatpush1.bf16.msk.msra.mxu0 %vm4802_vm2, %v3140_v21 }
  0xe0   : > { %2951 = vmatprep.subr.msk.bf16.mxu0 %vm5188_vm9, %v3140_v21 }
  0xe3   : > { %2953 = vmatpush1.bf16.msk.msra.mxu0 %vm5189_vm3, %v3140_v21 }
  0xe4   : > { %2955 = vmatprep.subr.msk.bf16.mxu0 %vm5190_vm5, %v3140_v21 }
  0xe7   : > { %2957 = vmatpush1.bf16.msk.msra.mxu0 %vm5191_vm14, %v3140_v21 }
  0xe8   : > { %2959 = vmatprep.subr.msk.bf16.mxu0 %vm4862_vm4, %v3140_v21 }
  0xeb   : > { %2961 = vmatpush1.bf16.msk.msra.mxu0 %vm4875_vm11, %v3140_v21  ;;  %v1743_v21 = vld [vmem:[%s5012_s4] sm:$0xff] }
  0xec   : > { %1747 = vperm.xlu0 %3042, %v1743_v21  }
  0xee   : > { %1732 = vmatmul.mubr.f32.vlgmr.msra.gmra.mrb[4].mxu0 %v3928_v59 }
  0xf0   : > { %1752 = vperm.xlu0 %3042, %v1744_v32  }
 0x140   : > { %v642_v23 = vpop.f32.mrb[0].mxu0 }
 0x141   : > { %v644_v24 = vpop.f32.mrb[1].mxu0 }
 0x142   : > { %v647_v25 = vmax.f32 %v642_v23, %v644_v24 }
 0x143   : > { %v914_v26 = vpop.f32.mrb[0].mxu1 }
 0x144   : > { %v919_v27 = vmax.f32 %v647_v25, %v914_v26  ;;  %v916_v28 = vpop.f32.mrb[1].mxu1 }
 0x146   : > { %v920_v29 = vmax.f32 %v919_v27, %v916_v28 }
 0x16b   : > { %v1748_v49 = vpop.permute.xlu0 %1747 }
 0x16f   : > { %v1753_v50 = vpop.permute.xlu0 %1752 }
 0x181   : > { %v1187_v33 = vpop.f32.mrb[2].mxu0 }
 0x182   : > { %v1192_v34 = vmax.f32 %v920_v29, %v1187_v33  ;;  %v1189_v35 = vpop.f32.mrb[3].mxu0 }
 0x184   : > { %v1193_v36 = vmax.f32 %v1192_v34, %v1189_v35  ;;  %v1460_v37 = vpop.f32.mrb[2].mxu1 }
 0x185   : > { %v1462_v38 = vpop.f32.mrb[3].mxu1 }
 0x186   : > { %v1465_v39 = vmax.f32 %v1193_v36, %v1460_v37 }
 0x188   : > { %v1466_v40 = vmax.f32 %v1465_v39, %v1462_v38 }
 0x1c1   : > { %v1733_v41 = vpop.f32.mrb[4].mxu0 }
 0x1c2   : > { %v1738_v42 = vmax.f32 %v1466_v40, %v1733_v41  ;;  %v1735_v43 = vpop.f32.mrb[5].mxu0 }
 0x1c4   : > { %v1739_v45 = vmax.f32 %v1738_v42, %v1735_v43 }
 0x1c6   : > { %v1740_v46 = vsub.f32 %v1739_v45, %v340_v44 }
 0x1c8   : > { %v2962_v47 = vpack.c.bf16 %v1740_v46, %v340_v44 }
 0x1ca   : > { %2963 = vmatprep.subr.bf16.mxu1 %v2962_v47 }
 0x1cb   : > { %2965 = vmatpush3.bf16.msra.mxu1 %v2962_v47 }
 0x1ce   : > { %2640 = vmatmul.mubr.msk.f32.vlgmr.msra.gmra.mrb[4].mxu1 %vm1755_vm0, %v1742_v48 }
 0x2a1   : > { %v2641_v51 = vpop.f32.mrb[4].mxu1 }
 0x2a2   : > { %v1834_v52 = vadd.f32 %v2641_v51, %v1753_v50  ;;  %v1828_v53 = vpop.f32.mrb[5].mxu1 }
 0x2a3   : > { %v1829_v54 = vadd.f32 %v1828_v53, %v1748_v49 }
 0x2a4   : > { %v1838_v55 = vmax.f32 %v1834_v52, 0.0 }
 0x2a5   : > { %v1837_v56 = vmax.f32 %v1829_v54, 0.0 }
 0x2a6   : > { %1840 = vst [vmem:[%s324_s15 + $0x8] sm:$0xff] %v1838_v55 }
 0x2a7   : > { %1839 = vst [vmem:[%s324_s15] sm:$0xff] %v1837_v56 }
 0x2a8   : > { %3057 = shalt.err (!%p3054_p11)
}
 0x2a9   : > { %s3058_s11 = scalar_lea.hbm %s4954_s22, 256  ;;  %s3062_s17 = scalar_lea.hbm %s5013_s5, 1024 }
 0x2aa   : > { %p3059_p12 = scmp.ne.s32.totalorder %s4954_s22, %s3058_s11  ;;  %p3063_p1 = scmp.lt.u32.totalorder %s4954_s22, %s5013_s5 }
 0x2ab   : > { %p3064_p2 = scmp.lt.u32.totalorder %s3062_s17, %s3058_s11  ;;  %p3066_p4 = scmp.lt.u32.totalorder %s3058_s11, %s4954_s22 }
 0x2ac   : > { %p3060_p13 = pnand %p3059_p12, %p3236_p8 }
 0x2ad   : > { %p3065_p3 = por %p3064_p2, %p3063_p1 }
 0x2ae   : > { %p3061_p0 = pneg %p3060_p13 }
 0x2af   : > { %p3067_p5 = por %p3066_p4, %p3065_p3 }
 0x2b1   : > { %p3068_p6 = pnand %p3067_p5, %p3061_p0 }
 0x2b3   : > { %3071 = shalt.err (!%p3068_p6)
}
 0x2b4   : > { %s3143_s30 = smov 128   ;;  %s3144_s9 = smov 256  }
 0x2b5   : > { %s3145_s10 = smov 8  }
 0x2b6   : > { %2966 = dma.vmem_to_hbm [thread:$0]  (%p3236_p8), %s4949_s16, 256, %s4954_s22, %s1842_s21, %s3143_s30, %s3144_s9, %s3145_s10  }
 0x2b7 PF: > { %p2972_p7 = scmp.ge.s32.totalorder %s3138_s25, 2  ;;  %s1871_s13 = sand.u32 1, %s3110_s18  }
 0x2b8   : > { %s1872_s11 = scalar_lea.sflag [#allocation4], %s1871_s13 }
 0x2b9   : > { %p2969_p10 = pnand %p2972_p7, %p3240_p9 }
 0x2bb   : > { %3105 = dma.done.wait (!%p2969_p10), %s1872_s11, 256  }
 0x2bc   : > { %3107 = vsyncadd (!%p2969_p10), %s1872_s11, 4294967040  ;;  %s18_s25 = sadd.s32 1, %s3138_s25   ;;  %s5192_s18 = smov %s3114_s19 }
 0x2bd   : > { %p15_p11 = scmp.ge.s32.totalorder %s18_s25, 6   ;;  %s5193_s19 = smov %s3118_s20 }
 0x2be   : > { %s5194_s20 = smov %s3248_s12  ;;  %s5195_s21 = smov %s3130_s23 }
 0x2bf   : > { %s5196_s22 = smov %s3134_s24  ;;  %s5197_s23 = smov %s5200_s28 }
 0x2c0   : > { %s5198_s24 = smov %s5204_s29  ;;  %17 = sbr.rel (!%p15_p11) target bundleno = 5 (0x5), region = 124 }
 0x2c7   :  { %1877 = vsyncpa [#allocation4], 1 }
 0x2c8   :  { %1879 = vsyncpa [#allocation4 + $0x1], 1 }

</bundles_post_ra>
